<compile_context>
chip_gen: v5e
topology: v5e:2x2
jax: 0.10.0
libtpu: 0.0.40
codegen_flags: <defaults>
</compile_context>

<pallas_src>
import jax
import jax.numpy as jnp
from jax.experimental import pallas as pl
from jax.experimental.pallas import tpu as pltpu


NUM_LAYERS = 6
F_PAD = 16          # padded feature width (covers F_in=9, hidden=4, F_out=2)


def _round_up(v, m):
    return (v + m - 1) // m * m


def _vmem_capacity_bytes():
    """Generation-aware VMEM capacity; conservative 64 MiB (v7x) fallback."""
    try:
        cap = int(getattr(pltpu.get_tpu_info(), "vmem_capacity_bytes", 0))
        if cap > 0:
            return cap
    except Exception:
        pass
    return 64 << 20


# --------------------- fast path: A resident in VMEM ----------------------- #
def gcn6_resident_kernel(a_ref, x_ref, w_ref, b_ref, o_ref):
    """All operands fully resident in VMEM; 6 layers unrolled in-kernel.

    a_ref : (n_pad, n_pad)            bf16  normalized adjacency (resident)
    x_ref : (n_pad, F_PAD)            f32   padded input features
    w_ref : (NUM_LAYERS, F_PAD, F_PAD) f32  zero-padded weights
    b_ref : (NUM_LAYERS, 1, F_PAD)    f32   zero-padded biases
    o_ref : (n_pad, F_PAD)            f32   output (last layer)
    """
    num_layers = w_ref.shape[0]
    a = a_ref[...]                       # bf16, stays in VMEM
    h = x_ref[...]                       # f32, tiny
    for l in range(num_layers):          # static unroll: full LLO visibility
        xw = jnp.dot(h, w_ref[l], preferred_element_type=jnp.float32)
        agg = jnp.dot(a, xw.astype(jnp.bfloat16),
                      preferred_element_type=jnp.float32)
        agg = agg + b_ref[l]
        h = jnp.tanh(agg) if l < num_layers - 1 else agg
    o_ref[...] = h


# ------------------- tiled path: A streamed once per layer ----------------- #
def gcn6_tiled_kernel(a_ref, x_ref, w_ref, b_ref, o_ref, xw_ref, h_ref):
    """Fused 6-layer GCN forward, A_hat row-tiled per layer.

    a_ref : (tm, n_pad)                bf16  row tile of A_hat
    x_ref : (n_pad, F_PAD)             f32   padded input features (resident)
    w_ref : (NUM_LAYERS, F_PAD, F_PAD) f32   full weight stack (loaded once)
    b_ref : (NUM_LAYERS, 1, F_PAD)     f32   full bias stack (loaded once)
    o_ref : (tm, F_PAD)                f32   output row tile (written last layer)
    xw_ref: (n_pad, F_PAD)             bf16  scratch: XW of current layer
    h_ref : (n_pad, F_PAD)             f32   scratch: resident activations
    """
    layer = pl.program_id(0)
    tile = pl.program_id(1)
    num_layers = pl.num_programs(0)
    tm = a_ref.shape[0]

    # Seed the resident activation buffer with the input features (once).
    @pl.when(jnp.logical_and(layer == 0, tile == 0))
    def _():
        h_ref[...] = x_ref[...]

    # Once per layer: XW = H @ W_l over ALL rows (tiny), kept in bf16 so the
    # big A @ XW matmul runs on the native bf16 MXU path.
    @pl.when(tile == 0)
    def _():
        xw = jnp.dot(h_ref[...], w_ref[layer],
                     preferred_element_type=jnp.float32)
        xw_ref[...] = xw.astype(jnp.bfloat16)

    # Aggregate this row tile: bf16 x bf16 -> f32 accumulation (no up-cast).
    agg = jnp.dot(a_ref[...], xw_ref[...], preferred_element_type=jnp.float32)
    agg = agg + b_ref[layer]
    act = jnp.where(layer < num_layers - 1, jnp.tanh(agg), agg)

    # Write rows back into the resident H buffer (input of the next layer).
    # Safe: this layer's XW was already captured above.
    row0 = pl.multiple_of(tile * tm, tm)
    h_ref[pl.ds(row0, tm), :] = act

    # Only the final layer's values need to reach HBM.
    @pl.when(layer == num_layers - 1)
    def _():
        o_ref[...] = act


# --------------------------------- wrapper ---------------------------------- #
def gcn6_pallas(a_hat_bf16, x, params, *, tm_target=1024, force_path=None):
    """Fused GCN_6 forward.  a_hat_bf16: [N, N] bf16, x: [N, F_in] f32."""
    n = x.shape[0]
    assert a_hat_bf16.shape == (n, n)
    assert len(params) == NUM_LAYERS
    assert x.shape[1] <= F_PAD
    f_out = params[-1][0].shape[1]

    vmem_cap = _vmem_capacity_bytes()
    usable = int(vmem_cap * 0.75)           # headroom for compiler scratch

    # ---- stacked, zero-padded weights / biases (tiny) ----------------------
    w_stack = jnp.zeros((NUM_LAYERS, F_PAD, F_PAD), jnp.float32)
    b_stack = jnp.zeros((NUM_LAYERS, 1, F_PAD), jnp.float32)
    for i, (w, b) in enumerate(params):
        w_stack = w_stack.at[i, : w.shape[0], : w.shape[1]].set(w)
        b_stack = b_stack.at[i, 0, : b.shape[0]].set(b)
    stacks_bytes = 2 * NUM_LAYERS * (F_PAD * F_PAD + F_PAD) * 4

    # ---------------------------- fast path check ---------------------------
    n_res = _round_up(max(n, 8), 128)
    resident_bytes = (n_res * n_res * 2            # A (bf16)
                      + 3 * n_res * F_PAD * 4      # x + H + out
                      + stacks_bytes)
    path = force_path or ("resident" if resident_bytes <= int(0.6 * usable)
                          else "tiled")

    if path == "resident":
        n_pad = n_res
        a_pad = jnp.zeros((n_pad, n_pad), jnp.bfloat16).at[:n, :n].set(a_hat_bf16)
        x_pad = jnp.zeros((n_pad, F_PAD), jnp.float32).at[:n, : x.shape[1]].set(
            x.astype(jnp.float32))

        flops = NUM_LAYERS * (2 * n_pad * n_pad * F_PAD
                              + 2 * n_pad * F_PAD * F_PAD)
        bytes_accessed = (n_pad * n_pad * 2          # A read ONCE
                          + 2 * n_pad * F_PAD * 4    # x in, out
                          + stacks_bytes)
        vmem_limit = int(min(max(2 * resident_bytes, 32 << 20), usable))

        out = pl.pallas_call(
            gcn6_resident_kernel,
            out_shape=jax.ShapeDtypeStruct((n_pad, F_PAD), jnp.float32),
            compiler_params=pltpu.CompilerParams(vmem_limit_bytes=vmem_limit),
            cost_estimate=pl.CostEstimate(
                flops=int(flops),
                transcendentals=int((NUM_LAYERS - 1) * n_pad * F_PAD),
                bytes_accessed=int(bytes_accessed)),
        )(a_pad, x_pad, w_stack, b_stack)
        return out[:n, :f_out]

    # ------------------------------ tiled path -------------------------------
    n16 = _round_up(max(n, 16), 16)
    # per-A-buffer budget: leave ~8 MiB for x / out / scratch / compiler use
    a_budget = max(1 << 20, (usable - (8 << 20)) // 2)
    tm_cap = max(16, (a_budget // (n16 * 2)) // 16 * 16)
    tm = int(min(tm_target, n16, tm_cap))
    n_pad = _round_up(n16, tm)
    num_tiles = n_pad // tm

    a_pad = jnp.zeros((n_pad, n_pad), jnp.bfloat16).at[:n, :n].set(a_hat_bf16)
    x_pad = jnp.zeros((n_pad, F_PAD), jnp.float32).at[:n, : x.shape[1]].set(
        x.astype(jnp.float32))

    flops = NUM_LAYERS * (2 * n_pad * n_pad * F_PAD + 2 * n_pad * F_PAD * F_PAD)
    transcendentals = (NUM_LAYERS - 1) * n_pad * F_PAD
    bytes_accessed = (NUM_LAYERS * n_pad * n_pad * 2      # A streamed per layer
                      + 2 * n_pad * F_PAD * 4             # x in, out
                      + stacks_bytes)
    vmem_need = (2 * tm * n_pad * 2            # A double buffer (bf16)
                 + 2 * n_pad * F_PAD * 4       # x (double buffered, resident)
                 + 2 * tm * F_PAD * 4          # out double buffer
                 + n_pad * F_PAD * (4 + 2)     # H (f32) + XW (bf16) scratch
                 + 2 * stacks_bytes)
    vmem_limit = int(min(max(vmem_need + (4 << 20), 16 << 20), usable))

    out = pl.pallas_call(
        gcn6_tiled_kernel,
        out_shape=jax.ShapeDtypeStruct((n_pad, F_PAD), jnp.float32),
        grid_spec=pltpu.PrefetchScalarGridSpec(
            num_scalar_prefetch=0,
            grid=(NUM_LAYERS, num_tiles),
            in_specs=[
                pl.BlockSpec((tm, n_pad), lambda l, t: (t, 0)),            # A
                pl.BlockSpec((n_pad, F_PAD), lambda l, t: (0, 0)),         # x
                pl.BlockSpec((NUM_LAYERS, F_PAD, F_PAD),
                             lambda l, t: (0, 0, 0)),                      # W stack
                pl.BlockSpec((NUM_LAYERS, 1, F_PAD),
                             lambda l, t: (0, 0, 0)),                      # b stack
            ],
            out_specs=pl.BlockSpec((tm, F_PAD), lambda l, t: (t, 0)),
            scratch_shapes=[
                pltpu.VMEM((n_pad, F_PAD), jnp.bfloat16),   # XW scratch (bf16)
                pltpu.VMEM((n_pad, F_PAD), jnp.float32),    # H scratch (resident)
            ],
        ),
        compiler_params=pltpu.CompilerParams(
            # layer axis is a true sequential dependency; row-tile axis carries
            # state through the shared H/XW scratch, so neither can be sharded.
            # TODO(synk): v7x megacore split of row tiles needs an H exchange.
            dimension_semantics=("arbitrary", "arbitrary"),
            vmem_limit_bytes=vmem_limit,
        ),
        cost_estimate=pl.CostEstimate(
            flops=int(flops),
            transcendentals=int(transcendentals),
            bytes_accessed=int(bytes_accessed),
        ),
    )(a_pad, x_pad, w_stack, b_stack)
    return out[:n, :f_out]


# ------------------------------- JAX glue ----------------------------------- #
def normalized_adjacency(edge_index, num_nodes):
    """Dense D^{-1/2}(A+I)D^{-1/2}, PyG GCNConv semantics:
    duplicate edges sum, self-loops added only where missing."""
    src, dst = edge_index[0], edge_index[1]
    a = jnp.zeros((num_nodes, num_nodes), jnp.float32).at[dst, src].add(1.0)
    diag = jnp.diagonal(a)
    a = a + jnp.diag(jnp.where(diag == 0.0, 1.0, 0.0))
    deg = jnp.sum(a, axis=1)
    d_inv_sqrt = jnp.where(deg > 0.0, jax.lax.rsqrt(deg), 0.0)
    return d_inv_sqrt[:, None] * a * d_inv_sqrt[None, :]


def init_params(key):
    """Deterministic glorot-uniform weights / zero biases (PyG GCNConv shapes).
    (torch.manual_seed(1234) cannot be reproduced bit-exactly in JAX.)"""
    dims = [(9, 4), (4, 4), (4, 4), (4, 4), (4, 4), (4, 2)]
    params = []
    for f_in, f_out in dims:
        key, wk = jax.random.split(key)
        limit = float(jnp.sqrt(6.0 / (f_in + f_out)))
        w = jax.random.uniform(wk, (f_in, f_out), jnp.float32, -limit, limit)
        params.append((w, jnp.zeros((f_out,), jnp.float32)))
    return params


def gcn6_forward(x, edge_index, params, *, tm_target=1024, force_path=None):
    # A_hat stored / streamed in bf16 (perf choice); kernel accumulates in f32.
    a_hat = normalized_adjacency(edge_index, x.shape[0]).astype(jnp.bfloat16)
    return gcn6_pallas(a_hat, x, params, tm_target=tm_target,
                       force_path=force_path)


# ------------------------------- reference ----------------------------------- #
def gcn6_reference(x, a_hat_f32, params):
    """Pure-JAX reference (f32, HIGHEST matmul precision, same A_hat values)."""
    hi = jax.lax.Precision.HIGHEST
    h = x
    for i, (w, b) in enumerate(params):
        xw = jnp.dot(h, w, precision=hi)
        h = jnp.dot(a_hat_f32, xw, precision=hi) + b[None, :]
        if i < len(params) - 1:
            h = jnp.tanh(h)
    return h


if __name__ == "__main__":
    params = init_params(jax.random.PRNGKey(1234))
    key = jax.random.PRNGKey(0)

    # ---- test 1: small undirected ring graph (resident fast path) ----------
    key, xk = jax.random.split(key)
    n1 = 8
    src = jnp.arange(n1, dtype=jnp.int32)
    dst = (src + 1) % n1
    edge_index1 = jnp.concatenate(
        [jnp.stack([src, dst], axis=0), jnp.stack([dst, src], axis=0)], axis=1)
    x1 = jax.random.normal(xk, (n1, 9), jnp.float32)

    out1 = jax.block_until_ready(gcn6_forward(x1, edge_index1, params))
    a1 = normalized_adjacency(edge_index1, n1).astype(jnp.bfloat16).astype(jnp.float32)
    ref1 = gcn6_reference(x1, a1, params)
    assert out1.shape == (n1, 2)
    err1 = float(jnp.max(jnp.abs(out1 - ref1)))
    assert jnp.allclose(out1, ref1, atol=3e-2, rtol=3e-2), err1

    # ---- test 2: random graph (resident fast path) --------------------------
    key, ek1, ek2, xk2 = jax.random.split(key, 4)
    n2, e2 = 40, 120
    edge_index2 = jnp.stack(
        [jax.random.randint(ek1, (e2,), 0, n2, dtype=jnp.int32),
         jax.random.randint(ek2, (e2,), 0, n2, dtype=jnp.int32)], axis=0)
    x2 = jax.random.normal(xk2, (n2, 9), jnp.float32)

    out2 = jax.block_until_ready(gcn6_forward(x2, edge_index2, params))
    a2 = normalized_adjacency(edge_index2, n2).astype(jnp.bfloat16).astype(jnp.float32)
    ref2 = gcn6_reference(x2, a2, params)
    assert out2.shape == (n2, 2)
    err2 = float(jnp.max(jnp.abs(out2 - ref2)))
    assert jnp.allclose(out2, ref2, atol=3e-2, rtol=3e-2), err2

    # ---- test 3: same graph, forced multi-tile streamed path ----------------
    out3 = jax.block_until_ready(
        gcn6_forward(x2, edge_index2, params, tm_target=16, force_path="tiled"))
    assert out3.shape == (n2, 2)
    err3 = float(jnp.max(jnp.abs(out3 - ref2)))
    assert jnp.allclose(out3, ref2, atol=3e-2, rtol=3e-2), err3

    print("KERNEL_OK")
</pallas_src>

<mosaic_0001>
module attributes {stable_mosaic.version = 11 : i64} {
  func.func @gcn6_resident_kernel(%arg0: memref<128x128xbf16, #tpu.memory_space<vmem>>, %arg1: memref<128x16xf32, #tpu.memory_space<vmem>>, %arg2: memref<6x16x16xf32, #tpu.memory_space<vmem>>, %arg3: memref<6x1x16xf32, #tpu.memory_space<vmem>>, %arg4: memref<128x16xf32, #tpu.memory_space<vmem>>) attributes {dimension_semantics = [], scalar_prefetch = 0 : i64, scratch_operands = 0 : i64, tpu.core_type = #tpu.core_type<tc>} {
    %c0 = arith.constant 0 : index
    %c0_0 = arith.constant 0 : index
    %0 = vector.load %arg0[%c0, %c0_0] : memref<128x128xbf16, #tpu.memory_space<vmem>>, vector<128x128xbf16>
    %c0_1 = arith.constant 0 : index
    %c0_2 = arith.constant 0 : index
    %1 = vector.load %arg1[%c0_1, %c0_2] : memref<128x16xf32, #tpu.memory_space<vmem>>, vector<128x16xf32>
    %c0_3 = arith.constant 0 : index
    %c0_4 = arith.constant 0 : index
    %c0_5 = arith.constant 0 : index
    %2 = vector.load %arg2[%c0_3, %c0_4, %c0_5] : memref<6x16x16xf32, #tpu.memory_space<vmem>>, vector<1x16x16xf32>
    %3 = vector.shape_cast %2 : vector<1x16x16xf32> to vector<16x16xf32>
    %cst = arith.constant dense<0.000000e+00> : vector<128x16xf32>
    %4 = tpu.matmul %1, %3, %cst {dimension_numbers = #tpu.dot_dimension_numbers<[1], [0], [0], [1], [0, 0, 1, 1], [], []>} : vector<128x16xf32>, vector<16x16xf32>, vector<128x16xf32> -> vector<128x16xf32>
    %5 = arith.truncf %4 : vector<128x16xf32> to vector<128x16xbf16>
    %cst_6 = arith.constant dense<0.000000e+00> : vector<128x16xf32>
    %6 = tpu.matmul %0, %5, %cst_6 {dimension_numbers = #tpu.dot_dimension_numbers<[1], [0], [0], [1], [0, 0, 1, 1], [], []>} : vector<128x128xbf16>, vector<128x16xbf16>, vector<128x16xf32> -> vector<128x16xf32>
    %c0_7 = arith.constant 0 : index
    %c0_8 = arith.constant 0 : index
    %c0_9 = arith.constant 0 : index
    %7 = vector.load %arg3[%c0_7, %c0_8, %c0_9] : memref<6x1x16xf32, #tpu.memory_space<vmem>>, vector<1x1x16xf32>
    %8 = vector.shape_cast %7 : vector<1x1x16xf32> to vector<1x16xf32>
    %9 = vector.broadcast %8 : vector<1x16xf32> to vector<128x16xf32>
    %10 = arith.addf %6, %9 : vector<128x16xf32>
    %11 = math.tanh %10 : vector<128x16xf32>
    %c1 = arith.constant 1 : index
    %c0_10 = arith.constant 0 : index
    %c0_11 = arith.constant 0 : index
    %12 = vector.load %arg2[%c1, %c0_10, %c0_11] : memref<6x16x16xf32, #tpu.memory_space<vmem>>, vector<1x16x16xf32>
    %13 = vector.shape_cast %12 : vector<1x16x16xf32> to vector<16x16xf32>
    %cst_12 = arith.constant dense<0.000000e+00> : vector<128x16xf32>
    %14 = tpu.matmul %11, %13, %cst_12 {dimension_numbers = #tpu.dot_dimension_numbers<[1], [0], [0], [1], [0, 0, 1, 1], [], []>} : vector<128x16xf32>, vector<16x16xf32>, vector<128x16xf32> -> vector<128x16xf32>
    %15 = arith.truncf %14 : vector<128x16xf32> to vector<128x16xbf16>
    %cst_13 = arith.constant dense<0.000000e+00> : vector<128x16xf32>
    %16 = tpu.matmul %0, %15, %cst_13 {dimension_numbers = #tpu.dot_dimension_numbers<[1], [0], [0], [1], [0, 0, 1, 1], [], []>} : vector<128x128xbf16>, vector<128x16xbf16>, vector<128x16xf32> -> vector<128x16xf32>
    %c1_14 = arith.constant 1 : index
    %c0_15 = arith.constant 0 : index
    %c0_16 = arith.constant 0 : index
    %17 = vector.load %arg3[%c1_14, %c0_15, %c0_16] : memref<6x1x16xf32, #tpu.memory_space<vmem>>, vector<1x1x16xf32>
    %18 = vector.shape_cast %17 : vector<1x1x16xf32> to vector<1x16xf32>
    %19 = vector.broadcast %18 : vector<1x16xf32> to vector<128x16xf32>
    %20 = arith.addf %16, %19 : vector<128x16xf32>
    %21 = math.tanh %20 : vector<128x16xf32>
    %c2 = arith.constant 2 : index
    %c0_17 = arith.constant 0 : index
    %c0_18 = arith.constant 0 : index
    %22 = vector.load %arg2[%c2, %c0_17, %c0_18] : memref<6x16x16xf32, #tpu.memory_space<vmem>>, vector<1x16x16xf32>
    %23 = vector.shape_cast %22 : vector<1x16x16xf32> to vector<16x16xf32>
    %cst_19 = arith.constant dense<0.000000e+00> : vector<128x16xf32>
    %24 = tpu.matmul %21, %23, %cst_19 {dimension_numbers = #tpu.dot_dimension_numbers<[1], [0], [0], [1], [0, 0, 1, 1], [], []>} : vector<128x16xf32>, vector<16x16xf32>, vector<128x16xf32> -> vector<128x16xf32>
    %25 = arith.truncf %24 : vector<128x16xf32> to vector<128x16xbf16>
    %cst_20 = arith.constant dense<0.000000e+00> : vector<128x16xf32>
    %26 = tpu.matmul %0, %25, %cst_20 {dimension_numbers = #tpu.dot_dimension_numbers<[1], [0], [0], [1], [0, 0, 1, 1], [], []>} : vector<128x128xbf16>, vector<128x16xbf16>, vector<128x16xf32> -> vector<128x16xf32>
    %c2_21 = arith.constant 2 : index
    %c0_22 = arith.constant 0 : index
    %c0_23 = arith.constant 0 : index
    %27 = vector.load %arg3[%c2_21, %c0_22, %c0_23] : memref<6x1x16xf32, #tpu.memory_space<vmem>>, vector<1x1x16xf32>
    %28 = vector.shape_cast %27 : vector<1x1x16xf32> to vector<1x16xf32>
    %29 = vector.broadcast %28 : vector<1x16xf32> to vector<128x16xf32>
    %30 = arith.addf %26, %29 : vector<128x16xf32>
    %31 = math.tanh %30 : vector<128x16xf32>
    %c3 = arith.constant 3 : index
    %c0_24 = arith.constant 0 : index
    %c0_25 = arith.constant 0 : index
    %32 = vector.load %arg2[%c3, %c0_24, %c0_25] : memref<6x16x16xf32, #tpu.memory_space<vmem>>, vector<1x16x16xf32>
    %33 = vector.shape_cast %32 : vector<1x16x16xf32> to vector<16x16xf32>
    %cst_26 = arith.constant dense<0.000000e+00> : vector<128x16xf32>
    %34 = tpu.matmul %31, %33, %cst_26 {dimension_numbers = #tpu.dot_dimension_numbers<[1], [0], [0], [1], [0, 0, 1, 1], [], []>} : vector<128x16xf32>, vector<16x16xf32>, vector<128x16xf32> -> vector<128x16xf32>
    %35 = arith.truncf %34 : vector<128x16xf32> to vector<128x16xbf16>
    %cst_27 = arith.constant dense<0.000000e+00> : vector<128x16xf32>
    %36 = tpu.matmul %0, %35, %cst_27 {dimension_numbers = #tpu.dot_dimension_numbers<[1], [0], [0], [1], [0, 0, 1, 1], [], []>} : vector<128x128xbf16>, vector<128x16xbf16>, vector<128x16xf32> -> vector<128x16xf32>
    %c3_28 = arith.constant 3 : index
    %c0_29 = arith.constant 0 : index
    %c0_30 = arith.constant 0 : index
    %37 = vector.load %arg3[%c3_28, %c0_29, %c0_30] : memref<6x1x16xf32, #tpu.memory_space<vmem>>, vector<1x1x16xf32>
    %38 = vector.shape_cast %37 : vector<1x1x16xf32> to vector<1x16xf32>
    %39 = vector.broadcast %38 : vector<1x16xf32> to vector<128x16xf32>
    %40 = arith.addf %36, %39 : vector<128x16xf32>
    %41 = math.tanh %40 : vector<128x16xf32>
    %c4 = arith.constant 4 : index
    %c0_31 = arith.constant 0 : index
    %c0_32 = arith.constant 0 : index
    %42 = vector.load %arg2[%c4, %c0_31, %c0_32] : memref<6x16x16xf32, #tpu.memory_space<vmem>>, vector<1x16x16xf32>
    %43 = vector.shape_cast %42 : vector<1x16x16xf32> to vector<16x16xf32>
    %cst_33 = arith.constant dense<0.000000e+00> : vector<128x16xf32>
    %44 = tpu.matmul %41, %43, %cst_33 {dimension_numbers = #tpu.dot_dimension_numbers<[1], [0], [0], [1], [0, 0, 1, 1], [], []>} : vector<128x16xf32>, vector<16x16xf32>, vector<128x16xf32> -> vector<128x16xf32>
    %45 = arith.truncf %44 : vector<128x16xf32> to vector<128x16xbf16>
    %cst_34 = arith.constant dense<0.000000e+00> : vector<128x16xf32>
    %46 = tpu.matmul %0, %45, %cst_34 {dimension_numbers = #tpu.dot_dimension_numbers<[1], [0], [0], [1], [0, 0, 1, 1], [], []>} : vector<128x128xbf16>, vector<128x16xbf16>, vector<128x16xf32> -> vector<128x16xf32>
    %c4_35 = arith.constant 4 : index
    %c0_36 = arith.constant 0 : index
    %c0_37 = arith.constant 0 : index
    %47 = vector.load %arg3[%c4_35, %c0_36, %c0_37] : memref<6x1x16xf32, #tpu.memory_space<vmem>>, vector<1x1x16xf32>
    %48 = vector.shape_cast %47 : vector<1x1x16xf32> to vector<1x16xf32>
    %49 = vector.broadcast %48 : vector<1x16xf32> to vector<128x16xf32>
    %50 = arith.addf %46, %49 : vector<128x16xf32>
    %51 = math.tanh %50 : vector<128x16xf32>
    %c5 = arith.constant 5 : index
    %c0_38 = arith.constant 0 : index
    %c0_39 = arith.constant 0 : index
    %52 = vector.load %arg2[%c5, %c0_38, %c0_39] : memref<6x16x16xf32, #tpu.memory_space<vmem>>, vector<1x16x16xf32>
    %53 = vector.shape_cast %52 : vector<1x16x16xf32> to vector<16x16xf32>
    %cst_40 = arith.constant dense<0.000000e+00> : vector<128x16xf32>
    %54 = tpu.matmul %51, %53, %cst_40 {dimension_numbers = #tpu.dot_dimension_numbers<[1], [0], [0], [1], [0, 0, 1, 1], [], []>} : vector<128x16xf32>, vector<16x16xf32>, vector<128x16xf32> -> vector<128x16xf32>
    %55 = arith.truncf %54 : vector<128x16xf32> to vector<128x16xbf16>
    %cst_41 = arith.constant dense<0.000000e+00> : vector<128x16xf32>
    %56 = tpu.matmul %0, %55, %cst_41 {dimension_numbers = #tpu.dot_dimension_numbers<[1], [0], [0], [1], [0, 0, 1, 1], [], []>} : vector<128x128xbf16>, vector<128x16xbf16>, vector<128x16xf32> -> vector<128x16xf32>
    %c5_42 = arith.constant 5 : index
    %c0_43 = arith.constant 0 : index
    %c0_44 = arith.constant 0 : index
    %57 = vector.load %arg3[%c5_42, %c0_43, %c0_44] : memref<6x1x16xf32, #tpu.memory_space<vmem>>, vector<1x1x16xf32>
    %58 = vector.shape_cast %57 : vector<1x1x16xf32> to vector<1x16xf32>
    %59 = vector.broadcast %58 : vector<1x16xf32> to vector<128x16xf32>
    %60 = arith.addf %56, %59 : vector<128x16xf32>
    %c0_45 = arith.constant 0 : index
    %c0_46 = arith.constant 0 : index
    %61 = vector.load %arg4[%c0_45, %c0_46] : memref<128x16xf32, #tpu.memory_space<vmem>>, vector<128x16xf32>
    tpu.vector_store %arg4[%c0_45, %c0_46], %60 {strides = array<i32>} : memref<128x16xf32, #tpu.memory_space<vmem>>, vector<128x16xf32>,
    return
  }
}

</mosaic_0001>

<bundles_post_ra>
// kernel: tpu_custom_call.1
= control target key start
LH: loop header
LB: loop body
LE: loop exit
PB: predicated region body
PF: predicated region fallthrough
CT: control target
= control target key end

     0   :  { %9 = vsyncpa [#allocation3], 0  ;;  %s1637_s18 = smov [#allocation2]   ;;  %s1638_s20 = smov 64   ;;  %s2076_s0 = inlined_call_operand.hbm [shape: bf16[128,128], index: 0, kind: input, shape index: {}]   ;;  %s2077_s1 = inlined_call_operand.vmem [shape: f32[128,16], index: 1, kind: input, shape index: {}]   ;;  %s2078_s2 = inlined_call_operand.vmem [shape: f32[6,16,16], index: 2, kind: input, shape index: {}]   ;;  %s2079_s3 = inlined_call_operand.vmem [shape: f32[6,1,16], index: 3, kind: input, shape index: {}]   ;;  %s2080_s4 = inlined_call_operand.vmem [shape: f32[128,16], index: 4, kind: output, shape index: {}]  }
   0x1   :  { %s14_s17 = sshll.u32 %s2076_s0, 4  ;;  %s16_s19 = sshll.u32 %s1637_s18, 4  ;;  %s15_s17 = int_to_ptr.hbm [resolvable:$true] %s14_s17  ;;  %s17_s19 = int_to_ptr.vmem [resolvable:$true] %s16_s19 }
   0x2   :  { %s1639_s21 = smov 4  }
   0x3   :  { %22 = dma.hbm_to_vmem [thread:$0]  %s15_s17, 1024, %s17_s19, [#allocation3], %s1638_s20, %s1638_s20, %s1639_s21  }
   0x4   :  { %1635 = dma.done.wait [#allocation3], 1024  }
   0x5   :  { %1636 = vsyncadd [#allocation3], 4294966272  ;;  %v66_v0 = vld [vmem:[%s2078_s2 + $0x8] sm:$0xff]  ;;  %v65_v1 = vld [vmem:[%s2078_s2] sm:$0xff]  ;;  %vm67_vm0 = vcmask 130048  }
   0x6   :  { %130 = vmatpush.msra.mxu0 %v66_v0  ;;  %v49_v2 = vld [vmem:[%s2077_s1] sm:$0xff]  ;;  %v50_v3 = vld [vmem:[%s2077_s1 + $0x8] sm:$0xff]  ;;  %v51_v4 = vld [vmem:[%s2077_s1 + $0x10] sm:$0xff] }
   0x7   :  { %v52_v5 = vld [vmem:[%s2077_s1 + $0x18] sm:$0xff]  ;;  %v53_v6 = vld [vmem:[%s2077_s1 + $0x20] sm:$0xff]  ;;  %v54_v7 = vld [vmem:[%s2077_s1 + $0x28] sm:$0xff] }
   0x8   :  { %131 = vmatpush.msra.mxu0 %v65_v1  ;;  %v55_v8 = vld [vmem:[%s2077_s1 + $0x30] sm:$0xff]  ;;  %v56_v9 = vld [vmem:[%s2077_s1 + $0x38] sm:$0xff]  ;;  %v57_v10 = vld [vmem:[%s2077_s1 + $0x40] sm:$0xff] }
   0x9   :  { %1281 = vmatmul.msk.f32.vlgmr.msra.gmra.mxu0 %vm67_vm0, %v49_v2  ;;  %v58_v11 = vld [vmem:[%s2077_s1 + $0x48] sm:$0xff]  ;;  %v59_v12 = vld [vmem:[%s2077_s1 + $0x50] sm:$0xff]  ;;  %v60_v13 = vld [vmem:[%s2077_s1 + $0x58] sm:$0xff] }
   0xa   :  { %v61_v14 = vld [vmem:[%s2077_s1 + $0x60] sm:$0xff]  ;;  %v62_v15 = vld [vmem:[%s2077_s1 + $0x68] sm:$0xff]  ;;  %v63_v16 = vld [vmem:[%s2077_s1 + $0x70] sm:$0xff] }
   0xb   :  { %v64_v17 = vld [vmem:[%s2077_s1 + $0x78] sm:$0xff]  ;;  %v1738_v42 = vld [vmem:[#allocation2] sm:$0xff]  ;;  %v1741_v43 = vld [vmem:[#allocation2 + $0x8] sm:$0xff] }
   0xc   :  { %v1744_v44 = vld [vmem:[#allocation2 + $0x10] sm:$0xff]  ;;  %v1747_v45 = vld [vmem:[#allocation2 + $0x18] sm:$0xff]  ;;  %v1750_v46 = vld [vmem:[#allocation2 + $0x20] sm:$0xff] }
   0xd   :  { %v1753_v47 = vld [vmem:[#allocation2 + $0x28] sm:$0xff]  ;;  %v1756_v48 = vld [vmem:[#allocation2 + $0x30] sm:$0xff]  ;;  %v1330_v49 = vld [vmem:[%s2078_s2 + $0x18] sm:$0xff] }
   0xe   :  { %371 = vmatpush.msra.mxu2 %v1330_v49  ;;  %v1329_v50 = vld [vmem:[%s2078_s2 + $0x10] sm:$0xff]  ;;  %v1765_v51 = vld [vmem:[#allocation2 + $0x38] sm:$0xff]  ;;  %v1771_v52 = vld [vmem:[%s2079_s3] ss:$0 sm:$0xff] }
  0x10   :  { %372 = vmatpush.msra.mxu2 %v1329_v50 }
  0x11   :  { %1282 = vmatmul.msk.f32.gmra.mxu0 %vm67_vm0, %v50_v3 }
  0x19   :  { %1283 = vmatmul.msk.f32.gmra.mxu0 %vm67_vm0, %v51_v4 }
  0x21   :  { %1284 = vmatmul.msk.f32.gmra.mxu0 %vm67_vm0, %v52_v5 }
  0x29   :  { %1285 = vmatmul.msk.f32.gmra.mxu0 %vm67_vm0, %v53_v6 }
  0x31   :  { %1286 = vmatmul.msk.f32.gmra.mxu0 %vm67_vm0, %v54_v7 }
  0x39   :  { %1287 = vmatmul.msk.f32.gmra.mxu0 %vm67_vm0, %v55_v8 }
  0x41   :  { %1288 = vmatmul.msk.f32.gmra.mxu0 %vm67_vm0, %v56_v9 }
  0x49   :  { %1289 = vmatmul.msk.f32.gmra.mxu0 %vm67_vm0, %v57_v10 }
  0x51   :  { %1290 = vmatmul.msk.f32.gmra.mxu0 %vm67_vm0, %v58_v11 }
  0x59   :  { %1291 = vmatmul.msk.f32.gmra.mxu0 %vm67_vm0, %v59_v12 }
  0x61   :  { %1292 = vmatmul.msk.f32.gmra.mxu0 %vm67_vm0, %v60_v13 }
  0x69   :  { %1293 = vmatmul.msk.f32.gmra.mxu0 %vm67_vm0, %v61_v14 }
  0x71   :  { %1294 = vmatmul.msk.f32.gmra.mxu0 %vm67_vm0, %v62_v15 }
  0x79   :  { %1295 = vmatmul.msk.f32.gmra.mxu0 %vm67_vm0, %v63_v16 }
  0x81   :  { %1296 = vmatmul.msk.f32.gmra.mxu0 %vm67_vm0, %v64_v17 }
  0x86   :  { %v133_v18 = vpop.f32.mrf.mxu0 }
  0x8e   :  { %v136_v19 = vpop.f32.mrf.mxu0 }
  0x8f   :  { %v181_v41 = vpack.c.bf16 %v136_v19, %v133_v18 }
  0x96   :  { %v139_v20 = vpop.f32.mrf.mxu0 }
  0x9e   :  { %v142_v21 = vpop.f32.mrf.mxu0 }
  0x9f   :  { %v182_v40 = vpack.c.bf16 %v142_v21, %v139_v20 }
  0xa6   :  { %v145_v22 = vpop.f32.mrf.mxu0 }
  0xae   :  { %v148_v23 = vpop.f32.mrf.mxu0 }
  0xaf   :  { %v183_v39 = vpack.c.bf16 %v148_v23, %v145_v22 }
  0xb6   :  { %v151_v24 = vpop.f32.mrf.mxu0 }
  0xbe   :  { %v154_v25 = vpop.f32.mrf.mxu0 }
  0xbf   :  { %v184_v38 = vpack.c.bf16 %v154_v25, %v151_v24 }
  0xc6   :  { %v157_v26 = vpop.f32.mrf.mxu0 }
  0xce   :  { %v160_v27 = vpop.f32.mrf.mxu0 }
  0xcf   :  { %v185_v37 = vpack.c.bf16 %v160_v27, %v157_v26 }
  0xd6   :  { %v163_v28 = vpop.f32.mrf.mxu0 }
  0xde   :  { %v166_v29 = vpop.f32.mrf.mxu0 }
  0xdf   :  { %v186_v36 = vpack.c.bf16 %v166_v29, %v163_v28 }
  0xe6   :  { %v169_v30 = vpop.f32.mrf.mxu0 }
  0xee   :  { %v172_v31 = vpop.f32.mrf.mxu0 }
  0xef   :  { %v187_v35 = vpack.c.bf16 %v172_v31, %v169_v30 }
  0xf6   :  { %v175_v32 = vpop.f32.mrf.mxu0 }
  0xfe   :  { %v178_v33 = vpop.f32.mrf.mxu0 }
  0xff   :  { %v188_v34 = vpack.c.bf16 %v178_v33, %v175_v32 }
 0x101   :  { %241 = vmatpush.bf16.msra.mxu1 %v188_v34 }
 0x105   :  { %242 = vmatpush.bf16.msra.mxu1 %v187_v35 }
 0x109   :  { %243 = vmatpush.bf16.msra.mxu1 %v186_v36 }
 0x10d   :  { %244 = vmatpush.bf16.msra.mxu1 %v185_v37 }
 0x111   :  { %245 = vmatpush.bf16.msra.mxu1 %v184_v38 }
 0x115   :  { %246 = vmatpush.bf16.msra.mxu1 %v183_v39 }
 0x119   :  { %247 = vmatpush.bf16.msra.mxu1 %v182_v40 }
 0x11d   :  { %248 = vmatpush.bf16.msra.mxu1 %v181_v41 }
 0x120   :  { %249 = vmatmul.bf16.vlgmr.msra.gmra.mxu1 %v1738_v42 }
 0x130   :  { %254 = vmatmul.bf16.gmra.mxu1 %v1741_v43 }
 0x140   :  { %259 = vmatmul.bf16.gmra.mxu1 %v1744_v44 }
 0x150   :  { %264 = vmatmul.bf16.gmra.mxu1 %v1747_v45 }
 0x160   :  { %269 = vmatmul.bf16.gmra.mxu1 %v1750_v46 }
 0x170   :  { %274 = vmatmul.bf16.gmra.mxu1 %v1753_v47 }
 0x180   :  { %279 = vmatmul.bf16.gmra.mxu1 %v1756_v48 }
 0x190   :  { %284 = vmatmul.bf16.gmra.mxu1 %v1765_v51 }
 0x19d   :  { %v250_v53 = vpop.f32.mrf.mxu1 }
 0x19e   :  { %v251_v54 = vadd.f32 %v1771_v52, %v250_v53 }
 0x1a0   :  { %1443 = vtanh.f32 %v251_v54 }
 0x1a5   :  { %v252_v55 = vpop.f32.mrf.mxu1 }
 0x1a6   :  { %v1444_v56 = vpop.eup %1443  ;;  %v253_v57 = vadd.f32 %v1771_v52, %v252_v55 }
 0x1a7   :  { %1331 = vmatmul.msk.f32.vlgmr.msra.gmra.mxu2 %vm67_vm0, %v1444_v56 }
 0x1a8   :  { %1445 = vtanh.f32 %v253_v57 }
 0x1ad   :  { %v255_v58 = vpop.f32.mrf.mxu1 }
 0x1ae   :  { %v1446_v59 = vpop.eup %1445  ;;  %v256_v60 = vadd.f32 %v1771_v52, %v255_v58 }
 0x1af   :  { %1332 = vmatmul.msk.f32.gmra.mxu2 %vm67_vm0, %v1446_v59 }
 0x1b0   :  { %1447 = vtanh.f32 %v256_v60 }
 0x1b5   :  { %v257_v61 = vpop.f32.mrf.mxu1 }
 0x1b6   :  { %v1448_v62 = vpop.eup %1447  ;;  %v258_v63 = vadd.f32 %v1771_v52, %v257_v61 }
 0x1b7   :  { %1333 = vmatmul.msk.f32.gmra.mxu2 %vm67_vm0, %v1448_v62 }
 0x1b8   :  { %1449 = vtanh.f32 %v258_v63 }
 0x1bd   :  { %v260_v0 = vpop.f32.mrf.mxu1 }
 0x1be   :  { %v1450_v1 = vpop.eup %1449  ;;  %v261_v2 = vadd.f32 %v1771_v52, %v260_v0 }
 0x1bf   :  { %1334 = vmatmul.msk.f32.gmra.mxu2 %vm67_vm0, %v1450_v1 }
 0x1c0   :  { %1451 = vtanh.f32 %v261_v2 }
 0x1c5   :  { %v262_v3 = vpop.f32.mrf.mxu1 }
 0x1c6   :  { %v1452_v4 = vpop.eup %1451  ;;  %v263_v5 = vadd.f32 %v1771_v52, %v262_v3 }
 0x1c7   :  { %1335 = vmatmul.msk.f32.gmra.mxu2 %vm67_vm0, %v1452_v4 }
 0x1c8   :  { %1453 = vtanh.f32 %v263_v5  ;;  %v1349_v5 = vld [vmem:[%s2078_s2 + $0x28] sm:$0xff] }
 0x1c9   :  { %565 = vmatpush.msrb.mxu0 %v1349_v5 }
 0x1cd   :  { %v265_v6 = vpop.f32.mrf.mxu1 }
 0x1ce   :  { %v1454_v7 = vpop.eup %1453  ;;  %v266_v8 = vadd.f32 %v1771_v52, %v265_v6  ;;  %v1348_v6 = vld [vmem:[%s2078_s2 + $0x20] sm:$0xff] }
 0x1cf   :  { %1336 = vmatmul.msk.f32.gmra.mxu2 %vm67_vm0, %v1454_v7  ;;  %566 = vmatpush.msrb.mxu0 %v1348_v6  ;;  %v1822_v7 = vld [vmem:[%s2079_s3 + $0x1] ss:$0 sm:$0xff] }
 0x1d0   :  { %1455 = vtanh.f32 %v266_v8 }
 0x1d5   :  { %v267_v9 = vpop.f32.mrf.mxu1 }
 0x1d6   :  { %v1456_v10 = vpop.eup %1455  ;;  %v268_v11 = vadd.f32 %v1771_v52, %v267_v9 }
 0x1d7   :  { %1337 = vmatmul.msk.f32.gmra.mxu2 %vm67_vm0, %v1456_v10 }
 0x1d8   :  { %1457 = vtanh.f32 %v268_v11 }
 0x1dd   :  { %v270_v12 = vpop.f32.mrf.mxu1 }
 0x1de   :  { %v1458_v13 = vpop.eup %1457  ;;  %v271_v14 = vadd.f32 %v1771_v52, %v270_v12 }
 0x1df   :  { %1338 = vmatmul.msk.f32.gmra.mxu2 %vm67_vm0, %v1458_v13 }
 0x1e0   :  { %1459 = vtanh.f32 %v271_v14 }
 0x1e5   :  { %v272_v15 = vpop.f32.mrf.mxu1 }
 0x1e6   :  { %v1460_v16 = vpop.eup %1459  ;;  %v273_v17 = vadd.f32 %v1771_v52, %v272_v15 }
 0x1e7   :  { %1339 = vmatmul.msk.f32.gmra.mxu2 %vm67_vm0, %v1460_v16 }
 0x1e8   :  { %1461 = vtanh.f32 %v273_v17 }
 0x1ed   :  { %v275_v18 = vpop.f32.mrf.mxu1 }
 0x1ee   :  { %v1462_v19 = vpop.eup %1461  ;;  %v276_v20 = vadd.f32 %v1771_v52, %v275_v18 }
 0x1ef   :  { %1340 = vmatmul.msk.f32.gmra.mxu2 %vm67_vm0, %v1462_v19 }
 0x1f0   :  { %1463 = vtanh.f32 %v276_v20 }
 0x1f5   :  { %v277_v21 = vpop.f32.mrf.mxu1 }
 0x1f6   :  { %v1464_v22 = vpop.eup %1463  ;;  %v278_v23 = vadd.f32 %v1771_v52, %v277_v21 }
 0x1f7   :  { %1341 = vmatmul.msk.f32.gmra.mxu2 %vm67_vm0, %v1464_v22 }
 0x1f8   :  { %1465 = vtanh.f32 %v278_v23 }
 0x1fd   :  { %v280_v24 = vpop.f32.mrf.mxu1 }
 0x1fe   :  { %v1466_v25 = vpop.eup %1465  ;;  %v281_v26 = vadd.f32 %v1771_v52, %v280_v24 }
 0x1ff   :  { %1342 = vmatmul.msk.f32.gmra.mxu2 %vm67_vm0, %v1466_v25 }
 0x200   :  { %1467 = vtanh.f32 %v281_v26 }
 0x205   :  { %v282_v27 = vpop.f32.mrf.mxu1 }
 0x206   :  { %v1468_v28 = vpop.eup %1467  ;;  %v283_v29 = vadd.f32 %v1771_v52, %v282_v27 }
 0x207   :  { %1343 = vmatmul.msk.f32.gmra.mxu2 %vm67_vm0, %v1468_v28 }
 0x208   :  { %1469 = vtanh.f32 %v283_v29 }
 0x20d   :  { %v285_v30 = vpop.f32.mrf.mxu1 }
 0x20e   :  { %v1470_v31 = vpop.eup %1469  ;;  %v286_v32 = vadd.f32 %v1771_v52, %v285_v30 }
 0x20f   :  { %1344 = vmatmul.msk.f32.gmra.mxu2 %vm67_vm0, %v1470_v31 }
 0x210   :  { %1471 = vtanh.f32 %v286_v32 }
 0x215   :  { %v287_v33 = vpop.f32.mrf.mxu1 }
 0x216   :  { %v1472_v34 = vpop.eup %1471  ;;  %v288_v35 = vadd.f32 %v1771_v52, %v287_v33 }
 0x217   :  { %1345 = vmatmul.msk.f32.gmra.mxu2 %vm67_vm0, %v1472_v34 }
 0x218   :  { %1473 = vtanh.f32 %v288_v35 }
 0x21e   :  { %v1474_v36 = vpop.eup %1473 }
 0x21f   :  { %1346 = vmatmul.msk.f32.gmra.mxu2 %vm67_vm0, %v1474_v36 }
 0x22a   :  { %v374_v37 = vpop.f32.mrf.mxu2 }
 0x232   :  { %v377_v38 = vpop.f32.mrf.mxu2 }
 0x233   :  { %v422_v4 = vpack.c.bf16 %v377_v38, %v374_v37 }
 0x23a   :  { %v380_v39 = vpop.f32.mrf.mxu2 }
 0x242   :  { %v383_v40 = vpop.f32.mrf.mxu2 }
 0x243   :  { %v423_v3 = vpack.c.bf16 %v383_v40, %v380_v39 }
 0x24a   :  { %v386_v41 = vpop.f32.mrf.mxu2 }
 0x252   :  { %v389_v49 = vpop.f32.mrf.mxu2 }
 0x253   :  { %v424_v2 = vpack.c.bf16 %v389_v49, %v386_v41 }
 0x25a   :  { %v392_v50 = vpop.f32.mrf.mxu2 }
 0x262   :  { %v395_v53 = vpop.f32.mrf.mxu2 }
 0x263   :  { %v425_v1 = vpack.c.bf16 %v395_v53, %v392_v50 }
 0x26a   :  { %v398_v54 = vpop.f32.mrf.mxu2 }
 0x272   :  { %v401_v55 = vpop.f32.mrf.mxu2 }
 0x273   :  { %v426_v0 = vpack.c.bf16 %v401_v55, %v398_v54 }
 0x27a   :  { %v404_v56 = vpop.f32.mrf.mxu2 }
 0x282   :  { %v407_v57 = vpop.f32.mrf.mxu2 }
 0x283   :  { %v427_v63 = vpack.c.bf16 %v407_v57, %v404_v56 }
 0x28a   :  { %v410_v58 = vpop.f32.mrf.mxu2 }
 0x292   :  { %v413_v52 = vpop.f32.mrf.mxu2 }
 0x293   :  { %v428_v62 = vpack.c.bf16 %v413_v52, %v410_v58 }
 0x29a   :  { %v416_v59 = vpop.f32.mrf.mxu2 }
 0x2a2   :  { %v419_v60 = vpop.f32.mrf.mxu2 }
 0x2a3   :  { %v429_v61 = vpack.c.bf16 %v419_v60, %v416_v59 }
 0x2a5   :  { %435 = vmatpush.bf16.msra.mxu3 %v429_v61 }
 0x2a9   :  { %436 = vmatpush.bf16.msra.mxu3 %v428_v62 }
 0x2ad   :  { %437 = vmatpush.bf16.msra.mxu3 %v427_v63 }
 0x2b1   :  { %438 = vmatpush.bf16.msra.mxu3 %v426_v0 }
 0x2b5   :  { %439 = vmatpush.bf16.msra.mxu3 %v425_v1 }
 0x2b9   :  { %440 = vmatpush.bf16.msra.mxu3 %v424_v2 }
 0x2bd   :  { %441 = vmatpush.bf16.msra.mxu3 %v423_v3 }
 0x2c1   :  { %442 = vmatpush.bf16.msra.mxu3 %v422_v4 }
 0x2c4   :  { %443 = vmatmul.bf16.vlgmr.msra.gmra.mxu3 %v1738_v42 }
 0x2d4   :  { %448 = vmatmul.bf16.gmra.mxu3 %v1741_v43 }
 0x2e4   :  { %453 = vmatmul.bf16.gmra.mxu3 %v1744_v44 }
 0x2f4   :  { %458 = vmatmul.bf16.gmra.mxu3 %v1747_v45 }
 0x304   :  { %463 = vmatmul.bf16.gmra.mxu3 %v1750_v46 }
 0x314   :  { %468 = vmatmul.bf16.gmra.mxu3 %v1753_v47 }
 0x324   :  { %473 = vmatmul.bf16.gmra.mxu3 %v1756_v48 }
 0x334   :  { %478 = vmatmul.bf16.gmra.mxu3 %v1765_v51 }
 0x347   :  { %v444_v8 = vpop.f32.mrf.mxu3 }
 0x348   :  { %v445_v9 = vadd.f32 %v1822_v7, %v444_v8 }
 0x34a   :  { %1475 = vtanh.f32 %v445_v9 }
 0x34f   :  { %v446_v10 = vpop.f32.mrf.mxu3 }
 0x350   :  { %v1476_v11 = vpop.eup %1475  ;;  %v447_v12 = vadd.f32 %v1822_v7, %v446_v10 }
 0x351   :  { %1350 = vmatmul.msk.f32.vlgmr.msrb.gmra.mxu0 %vm67_vm0, %v1476_v11 }
 0x352   :  { %1477 = vtanh.f32 %v447_v12 }
 0x357   :  { %v449_v13 = vpop.f32.mrf.mxu3 }
 0x358   :  { %v1478_v14 = vpop.eup %1477  ;;  %v450_v15 = vadd.f32 %v1822_v7, %v449_v13 }
 0x359   :  { %1351 = vmatmul.msk.f32.gmra.mxu0 %vm67_vm0, %v1478_v14 }
 0x35a   :  { %1479 = vtanh.f32 %v450_v15 }
 0x35f   :  { %v451_v16 = vpop.f32.mrf.mxu3 }
 0x360   :  { %v1480_v17 = vpop.eup %1479  ;;  %v452_v18 = vadd.f32 %v1822_v7, %v451_v16 }
 0x361   :  { %1352 = vmatmul.msk.f32.gmra.mxu0 %vm67_vm0, %v1480_v17 }
 0x362   :  { %1481 = vtanh.f32 %v452_v18 }
 0x367   :  { %v454_v19 = vpop.f32.mrf.mxu3 }
 0x368   :  { %v1482_v20 = vpop.eup %1481  ;;  %v455_v21 = vadd.f32 %v1822_v7, %v454_v19 }
 0x369   :  { %1353 = vmatmul.msk.f32.gmra.mxu0 %vm67_vm0, %v1482_v20 }
 0x36a   :  { %1483 = vtanh.f32 %v455_v21 }
 0x36f   :  { %v456_v22 = vpop.f32.mrf.mxu3 }
 0x370   :  { %v1484_v23 = vpop.eup %1483  ;;  %v457_v24 = vadd.f32 %v1822_v7, %v456_v22 }
 0x371   :  { %1354 = vmatmul.msk.f32.gmra.mxu0 %vm67_vm0, %v1484_v23 }
 0x372   :  { %1485 = vtanh.f32 %v457_v24  ;;  %v1368_v24 = vld [vmem:[%s2078_s2 + $0x38] sm:$0xff] }
 0x373   :  { %1432 = vmatpush.msrb.mxu1 %v1368_v24  ;;  %759 = vmatpush.msra.mxu0 %v1368_v24 }
 0x377   :  { %v459_v25 = vpop.f32.mrf.mxu3 }
 0x378   :  { %v1486_v26 = vpop.eup %1485  ;;  %v460_v27 = vadd.f32 %v1822_v7, %v459_v25  ;;  %v1367_v25 = vld [vmem:[%s2078_s2 + $0x30] sm:$0xff] }
 0x379   :  { %1355 = vmatmul.msk.f32.gmra.mxu0 %vm67_vm0, %v1486_v26  ;;  %1433 = vmatpush.msrb.mxu1 %v1367_v25  ;;  %v1873_v26 = vld [vmem:[%s2079_s3 + $0x2] ss:$0 sm:$0xff] }
 0x37a   :  { %1487 = vtanh.f32 %v460_v27  ;;  %760 = vmatpush.msra.mxu0 %v1367_v25 }
 0x37f   :  { %v461_v28 = vpop.f32.mrf.mxu3 }
 0x380   :  { %v1488_v29 = vpop.eup %1487  ;;  %v462_v30 = vadd.f32 %v1822_v7, %v461_v28 }
 0x381   :  { %1356 = vmatmul.msk.f32.gmra.mxu0 %vm67_vm0, %v1488_v29 }
 0x382   :  { %1489 = vtanh.f32 %v462_v30 }
 0x387   :  { %v464_v31 = vpop.f32.mrf.mxu3 }
 0x388   :  { %v1490_v32 = vpop.eup %1489  ;;  %v465_v33 = vadd.f32 %v1822_v7, %v464_v31 }
 0x389   :  { %1357 = vmatmul.msk.f32.gmra.mxu0 %vm67_vm0, %v1490_v32 }
 0x38a   :  { %1491 = vtanh.f32 %v465_v33 }
 0x38f   :  { %v466_v34 = vpop.f32.mrf.mxu3 }
 0x390   :  { %v1492_v35 = vpop.eup %1491  ;;  %v467_v36 = vadd.f32 %v1822_v7, %v466_v34 }
 0x391   :  { %1358 = vmatmul.msk.f32.gmra.mxu0 %vm67_vm0, %v1492_v35 }
 0x392   :  { %1493 = vtanh.f32 %v467_v36 }
 0x397   :  { %v469_v37 = vpop.f32.mrf.mxu3 }
 0x398   :  { %v1494_v38 = vpop.eup %1493  ;;  %v470_v39 = vadd.f32 %v1822_v7, %v469_v37 }
 0x399   :  { %1359 = vmatmul.msk.f32.gmra.mxu0 %vm67_vm0, %v1494_v38 }
 0x39a   :  { %1495 = vtanh.f32 %v470_v39 }
 0x39f   :  { %v471_v40 = vpop.f32.mrf.mxu3 }
 0x3a0   :  { %v1496_v41 = vpop.eup %1495  ;;  %v472_v49 = vadd.f32 %v1822_v7, %v471_v40 }
 0x3a1   :  { %1360 = vmatmul.msk.f32.gmra.mxu0 %vm67_vm0, %v1496_v41 }
 0x3a2   :  { %1497 = vtanh.f32 %v472_v49 }
 0x3a7   :  { %v474_v50 = vpop.f32.mrf.mxu3 }
 0x3a8   :  { %v1498_v53 = vpop.eup %1497  ;;  %v475_v54 = vadd.f32 %v1822_v7, %v474_v50 }
 0x3a9   :  { %1361 = vmatmul.msk.f32.gmra.mxu0 %vm67_vm0, %v1498_v53 }
 0x3aa   :  { %1499 = vtanh.f32 %v475_v54 }
 0x3af   :  { %v476_v55 = vpop.f32.mrf.mxu3 }
 0x3b0   :  { %v1500_v56 = vpop.eup %1499  ;;  %v477_v57 = vadd.f32 %v1822_v7, %v476_v55 }
 0x3b1   :  { %1362 = vmatmul.msk.f32.gmra.mxu0 %vm67_vm0, %v1500_v56 }
 0x3b2   :  { %1501 = vtanh.f32 %v477_v57 }
 0x3b7   :  { %v479_v58 = vpop.f32.mrf.mxu3 }
 0x3b8   :  { %v1502_v52 = vpop.eup %1501  ;;  %v480_v59 = vadd.f32 %v1822_v7, %v479_v58 }
 0x3b9   :  { %1363 = vmatmul.msk.f32.gmra.mxu0 %vm67_vm0, %v1502_v52 }
 0x3ba   :  { %1503 = vtanh.f32 %v480_v59 }
 0x3bf   :  { %v481_v60 = vpop.f32.mrf.mxu3 }
 0x3c0   :  { %v1504_v61 = vpop.eup %1503  ;;  %v482_v62 = vadd.f32 %v1822_v7, %v481_v60 }
 0x3c1   :  { %1364 = vmatmul.msk.f32.gmra.mxu0 %vm67_vm0, %v1504_v61 }
 0x3c2   :  { %1505 = vtanh.f32 %v482_v62 }
 0x3c8   :  { %v1506_v63 = vpop.eup %1505 }
 0x3c9   :  { %1365 = vmatmul.msk.f32.gmra.mxu0 %vm67_vm0, %v1506_v63 }
 0x3ce   :  { %v568_v0 = vpop.f32.mrf.mxu0 }
 0x3d6   :  { %v571_v1 = vpop.f32.mrf.mxu0 }
 0x3d7   :  { %v616_v23 = vpack.c.bf16 %v571_v1, %v568_v0 }
 0x3de   :  { %v574_v2 = vpop.f32.mrf.mxu0 }
 0x3e6   :  { %v577_v3 = vpop.f32.mrf.mxu0 }
 0x3e7   :  { %v617_v22 = vpack.c.bf16 %v577_v3, %v574_v2 }
 0x3ee   :  { %v580_v4 = vpop.f32.mrf.mxu0 }
 0x3f6   :  { %v583_v5 = vpop.f32.mrf.mxu0 }
 0x3f7   :  { %v618_v21 = vpack.c.bf16 %v583_v5, %v580_v4 }
 0x3fe   :  { %v586_v6 = vpop.f32.mrf.mxu0 }
 0x406   :  { %v589_v8 = vpop.f32.mrf.mxu0 }
 0x407   :  { %v619_v20 = vpack.c.bf16 %v589_v8, %v586_v6 }
 0x40e   :  { %v592_v9 = vpop.f32.mrf.mxu0 }
 0x416   :  { %v595_v10 = vpop.f32.mrf.mxu0 }
 0x417   :  { %v620_v19 = vpack.c.bf16 %v595_v10, %v592_v9 }
 0x41e   :  { %v598_v11 = vpop.f32.mrf.mxu0 }
 0x426   :  { %v601_v12 = vpop.f32.mrf.mxu0 }
 0x427   :  { %v621_v18 = vpack.c.bf16 %v601_v12, %v598_v11 }
 0x42e   :  { %v604_v13 = vpop.f32.mrf.mxu0 }
 0x436   :  { %v607_v7 = vpop.f32.mrf.mxu0 }
 0x437   :  { %v622_v17 = vpack.c.bf16 %v607_v7, %v604_v13 }
 0x43e   :  { %v610_v14 = vpop.f32.mrf.mxu0 }
 0x446   :  { %v613_v15 = vpop.f32.mrf.mxu0 }
 0x447   :  { %v623_v16 = vpack.c.bf16 %v613_v15, %v610_v14 }
 0x449   :  { %629 = vmatpush.bf16.msrb.mxu2 %v623_v16 }
 0x44d   :  { %630 = vmatpush.bf16.msrb.mxu2 %v622_v17 }
 0x451   :  { %631 = vmatpush.bf16.msrb.mxu2 %v621_v18 }
 0x455   :  { %632 = vmatpush.bf16.msrb.mxu2 %v620_v19 }
 0x459   :  { %633 = vmatpush.bf16.msrb.mxu2 %v619_v20 }
 0x45d   :  { %634 = vmatpush.bf16.msrb.mxu2 %v618_v21 }
 0x461   :  { %635 = vmatpush.bf16.msrb.mxu2 %v617_v22 }
 0x465   :  { %636 = vmatpush.bf16.msrb.mxu2 %v616_v23 }
 0x468   :  { %637 = vmatmul.bf16.vlgmr.msrb.gmra.mxu2 %v1738_v42 }
 0x478   :  { %642 = vmatmul.bf16.gmra.mxu2 %v1741_v43 }
 0x488   :  { %647 = vmatmul.bf16.gmra.mxu2 %v1744_v44 }
 0x498   :  { %652 = vmatmul.bf16.gmra.mxu2 %v1747_v45 }
 0x4a8   :  { %657 = vmatmul.bf16.gmra.mxu2 %v1750_v46 }
 0x4b8   :  { %662 = vmatmul.bf16.gmra.mxu2 %v1753_v47 }
 0x4c8   :  { %667 = vmatmul.bf16.gmra.mxu2 %v1756_v48 }
 0x4d8   :  { %672 = vmatmul.bf16.gmra.mxu2 %v1765_v51 }
 0x4eb   :  { %v638_v27 = vpop.f32.mrf.mxu2 }
 0x4ec   :  { %v639_v28 = vadd.f32 %v1873_v26, %v638_v27 }
 0x4ee   :  { %1507 = vtanh.f32 %v639_v28 }
 0x4f3   :  { %v640_v29 = vpop.f32.mrf.mxu2 }
 0x4f4   :  { %v1508_v30 = vpop.eup %1507  ;;  %v641_v31 = vadd.f32 %v1873_v26, %v640_v29 }
 0x4f5   :  { %1369 = vmatmul.msk.f32.vlgmr.msra.gmra.mxu0 %vm67_vm0, %v1508_v30 }
 0x4f6   :  { %1509 = vtanh.f32 %v641_v31 }
 0x4fb   :  { %v643_v32 = vpop.f32.mrf.mxu2 }
 0x4fc   :  { %v1510_v33 = vpop.eup %1509  ;;  %v644_v34 = vadd.f32 %v1873_v26, %v643_v32 }
 0x4fd   :  { %1370 = vmatmul.msk.f32.vlgmr.msrb.gmra.mxu1 %vm67_vm0, %v1510_v33 }
 0x4fe   :  { %1511 = vtanh.f32 %v644_v34 }
 0x503   :  { %v645_v35 = vpop.f32.mrf.mxu2 }
 0x504   :  { %v1512_v36 = vpop.eup %1511  ;;  %v646_v37 = vadd.f32 %v1873_v26, %v645_v35 }
 0x505   :  { %1371 = vmatmul.msk.f32.gmra.mxu1 %vm67_vm0, %v1512_v36 }
 0x506   :  { %1513 = vtanh.f32 %v646_v37 }
 0x50b   :  { %v648_v38 = vpop.f32.mrf.mxu2 }
 0x50c   :  { %v1514_v39 = vpop.eup %1513  ;;  %v649_v40 = vadd.f32 %v1873_v26, %v648_v38 }
 0x50d   :  { %1372 = vmatmul.msk.f32.gmra.mxu1 %vm67_vm0, %v1514_v39 }
 0x50e   :  { %1515 = vtanh.f32 %v649_v40 }
 0x513   :  { %v650_v41 = vpop.f32.mrf.mxu2 }
 0x514   :  { %v1516_v49 = vpop.eup %1515  ;;  %v651_v50 = vadd.f32 %v1873_v26, %v650_v41 }
 0x515   :  { %1373 = vmatmul.msk.f32.gmra.mxu1 %vm67_vm0, %v1516_v49 }
 0x516   :  { %1517 = vtanh.f32 %v651_v50  ;;  %v1387_v50 = vld [vmem:[%s2078_s2 + $0x48] sm:$0xff] }
 0x517   :  { %953 = vmatpush.msrb.mxu0 %v1387_v50 }
 0x51b   :  { %v653_v53 = vpop.f32.mrf.mxu2 }
 0x51c   :  { %v1518_v54 = vpop.eup %1517  ;;  %v654_v55 = vadd.f32 %v1873_v26, %v653_v53  ;;  %v1386_v53 = vld [vmem:[%s2078_s2 + $0x40] sm:$0xff] }
 0x51d   :  { %1374 = vmatmul.msk.f32.gmra.mxu1 %vm67_vm0, %v1518_v54  ;;  %954 = vmatpush.msrb.mxu0 %v1386_v53  ;;  %v1924_v54 = vld [vmem:[%s2079_s3 + $0x3] ss:$0 sm:$0xff] }
 0x51e   :  { %1519 = vtanh.f32 %v654_v55 }
 0x523   :  { %v655_v56 = vpop.f32.mrf.mxu2 }
 0x524   :  { %v1520_v57 = vpop.eup %1519  ;;  %v656_v58 = vadd.f32 %v1873_v26, %v655_v56 }
 0x525   :  { %1375 = vmatmul.msk.f32.gmra.mxu1 %vm67_vm0, %v1520_v57 }
 0x526   :  { %1521 = vtanh.f32 %v656_v58 }
 0x52b   :  { %v658_v52 = vpop.f32.mrf.mxu2 }
 0x52c   :  { %v1522_v59 = vpop.eup %1521  ;;  %v659_v60 = vadd.f32 %v1873_v26, %v658_v52 }
 0x52d   :  { %1376 = vmatmul.msk.f32.gmra.mxu1 %vm67_vm0, %v1522_v59 }
 0x52e   :  { %1523 = vtanh.f32 %v659_v60 }
 0x533   :  { %v660_v61 = vpop.f32.mrf.mxu2 }
 0x534   :  { %v1524_v62 = vpop.eup %1523  ;;  %v661_v63 = vadd.f32 %v1873_v26, %v660_v61 }
 0x535   :  { %1377 = vmatmul.msk.f32.gmra.mxu1 %vm67_vm0, %v1524_v62 }
 0x536   :  { %1525 = vtanh.f32 %v661_v63 }
 0x53b   :  { %v663_v0 = vpop.f32.mrf.mxu2 }
 0x53c   :  { %v1526_v1 = vpop.eup %1525  ;;  %v664_v2 = vadd.f32 %v1873_v26, %v663_v0 }
 0x53d   :  { %1378 = vmatmul.msk.f32.gmra.mxu1 %vm67_vm0, %v1526_v1 }
 0x53e   :  { %1527 = vtanh.f32 %v664_v2 }
 0x543   :  { %v665_v3 = vpop.f32.mrf.mxu2 }
 0x544   :  { %v1528_v4 = vpop.eup %1527  ;;  %v666_v5 = vadd.f32 %v1873_v26, %v665_v3 }
 0x545   :  { %1379 = vmatmul.msk.f32.gmra.mxu1 %vm67_vm0, %v1528_v4 }
 0x546   :  { %1529 = vtanh.f32 %v666_v5 }
 0x54b   :  { %v668_v6 = vpop.f32.mrf.mxu2 }
 0x54c   :  { %v1530_v8 = vpop.eup %1529  ;;  %v669_v9 = vadd.f32 %v1873_v26, %v668_v6 }
 0x54d   :  { %1380 = vmatmul.msk.f32.gmra.mxu1 %vm67_vm0, %v1530_v8 }
 0x54e   :  { %1531 = vtanh.f32 %v669_v9 }
 0x553   :  { %v670_v10 = vpop.f32.mrf.mxu2 }
 0x554   :  { %v1532_v11 = vpop.eup %1531  ;;  %v671_v12 = vadd.f32 %v1873_v26, %v670_v10 }
 0x555   :  { %1381 = vmatmul.msk.f32.gmra.mxu1 %vm67_vm0, %v1532_v11 }
 0x556   :  { %1533 = vtanh.f32 %v671_v12 }
 0x55b   :  { %v673_v13 = vpop.f32.mrf.mxu2 }
 0x55c   :  { %v1534_v7 = vpop.eup %1533  ;;  %v674_v14 = vadd.f32 %v1873_v26, %v673_v13 }
 0x55d   :  { %1382 = vmatmul.msk.f32.gmra.mxu1 %vm67_vm0, %v1534_v7 }
 0x55e   :  { %1535 = vtanh.f32 %v674_v14 }
 0x563   :  { %v675_v15 = vpop.f32.mrf.mxu2 }
 0x564   :  { %v1536_v16 = vpop.eup %1535  ;;  %v676_v17 = vadd.f32 %v1873_v26, %v675_v15 }
 0x565   :  { %1383 = vmatmul.msk.f32.gmra.mxu1 %vm67_vm0, %v1536_v16 }
 0x566   :  { %1537 = vtanh.f32 %v676_v17 }
 0x56c   :  { %v1538_v18 = vpop.eup %1537 }
 0x56d   :  { %1384 = vmatmul.msk.f32.gmra.mxu1 %vm67_vm0, %v1538_v18 }
 0x572   :  { %v762_v41 = vpop.f32.mrf.mxu0 }
 0x57a   :  { %v765_v19 = vpop.f32.mrf.mxu1 }
 0x57b   :  { %v810_v49 = vpack.c.bf16 %v765_v19, %v762_v41 }
 0x582   :  { %v768_v20 = vpop.f32.mrf.mxu1 }
 0x58a   :  { %v771_v21 = vpop.f32.mrf.mxu1 }
 0x58b   :  { %v811_v40 = vpack.c.bf16 %v771_v21, %v768_v20 }
 0x592   :  { %v774_v22 = vpop.f32.mrf.mxu1 }
 0x59a   :  { %v777_v23 = vpop.f32.mrf.mxu1 }
 0x59b   :  { %v812_v39 = vpack.c.bf16 %v777_v23, %v774_v22 }
 0x5a2   :  { %v780_v24 = vpop.f32.mrf.mxu1 }
 0x5aa   :  { %v783_v25 = vpop.f32.mrf.mxu1 }
 0x5ab   :  { %v813_v38 = vpack.c.bf16 %v783_v25, %v780_v24 }
 0x5b2   :  { %v786_v27 = vpop.f32.mrf.mxu1 }
 0x5ba   :  { %v789_v28 = vpop.f32.mrf.mxu1 }
 0x5bb   :  { %v814_v37 = vpack.c.bf16 %v789_v28, %v786_v27 }
 0x5c2   :  { %v792_v29 = vpop.f32.mrf.mxu1 }
 0x5ca   :  { %v795_v30 = vpop.f32.mrf.mxu1 }
 0x5cb   :  { %v815_v36 = vpack.c.bf16 %v795_v30, %v792_v29 }
 0x5d2   :  { %v798_v31 = vpop.f32.mrf.mxu1 }
 0x5da   :  { %v801_v32 = vpop.f32.mrf.mxu1 }
 0x5db   :  { %v816_v35 = vpack.c.bf16 %v801_v32, %v798_v31 }
 0x5e2   :  { %v804_v26 = vpop.f32.mrf.mxu1 }
 0x5ea   :  { %v807_v33 = vpop.f32.mrf.mxu1 }
 0x5eb   :  { %v817_v34 = vpack.c.bf16 %v807_v33, %v804_v26 }
 0x5ed   :  { %823 = vmatpush.bf16.msrb.mxu3 %v817_v34 }
 0x5f1   :  { %824 = vmatpush.bf16.msrb.mxu3 %v816_v35 }
 0x5f5   :  { %825 = vmatpush.bf16.msrb.mxu3 %v815_v36 }
 0x5f9   :  { %826 = vmatpush.bf16.msrb.mxu3 %v814_v37 }
 0x5fd   :  { %827 = vmatpush.bf16.msrb.mxu3 %v813_v38 }
 0x601   :  { %828 = vmatpush.bf16.msrb.mxu3 %v812_v39 }
 0x605   :  { %829 = vmatpush.bf16.msrb.mxu3 %v811_v40 }
 0x609   :  { %830 = vmatpush.bf16.msrb.mxu3 %v810_v49 }
 0x60c   :  { %831 = vmatmul.bf16.vlgmr.msrb.gmra.mxu3 %v1738_v42 }
 0x61c   :  { %836 = vmatmul.bf16.gmra.mxu3 %v1741_v43 }
 0x62c   :  { %841 = vmatmul.bf16.gmra.mxu3 %v1744_v44 }
 0x63c   :  { %846 = vmatmul.bf16.gmra.mxu3 %v1747_v45 }
 0x64c   :  { %851 = vmatmul.bf16.gmra.mxu3 %v1750_v46 }
 0x65c   :  { %856 = vmatmul.bf16.gmra.mxu3 %v1753_v47 }
 0x66c   :  { %861 = vmatmul.bf16.gmra.mxu3 %v1756_v48 }
 0x67c   :  { %866 = vmatmul.bf16.gmra.mxu3 %v1765_v51 }
 0x68f   :  { %v832_v55 = vpop.f32.mrf.mxu3 }
 0x690   :  { %v833_v56 = vadd.f32 %v1924_v54, %v832_v55 }
 0x692   :  { %1539 = vtanh.f32 %v833_v56 }
 0x697   :  { %v834_v57 = vpop.f32.mrf.mxu3 }
 0x698   :  { %v1540_v58 = vpop.eup %1539  ;;  %v835_v52 = vadd.f32 %v1924_v54, %v834_v57 }
 0x699   :  { %1388 = vmatmul.msk.f32.vlgmr.msrb.gmra.mxu0 %vm67_vm0, %v1540_v58 }
 0x69a   :  { %1541 = vtanh.f32 %v835_v52 }
 0x69f   :  { %v837_v59 = vpop.f32.mrf.mxu3 }
 0x6a0   :  { %v1542_v60 = vpop.eup %1541  ;;  %v838_v61 = vadd.f32 %v1924_v54, %v837_v59 }
 0x6a1   :  { %1389 = vmatmul.msk.f32.gmra.mxu0 %vm67_vm0, %v1542_v60 }
 0x6a2   :  { %1543 = vtanh.f32 %v838_v61 }
 0x6a7   :  { %v839_v62 = vpop.f32.mrf.mxu3 }
 0x6a8   :  { %v1544_v63 = vpop.eup %1543  ;;  %v840_v0 = vadd.f32 %v1924_v54, %v839_v62 }
 0x6a9   :  { %1390 = vmatmul.msk.f32.gmra.mxu0 %vm67_vm0, %v1544_v63 }
 0x6aa   :  { %1545 = vtanh.f32 %v840_v0 }
 0x6af   :  { %v842_v1 = vpop.f32.mrf.mxu3 }
 0x6b0   :  { %v1546_v2 = vpop.eup %1545  ;;  %v843_v3 = vadd.f32 %v1924_v54, %v842_v1 }
 0x6b1   :  { %1391 = vmatmul.msk.f32.gmra.mxu0 %vm67_vm0, %v1546_v2 }
 0x6b2   :  { %1547 = vtanh.f32 %v843_v3 }
 0x6b7   :  { %v844_v4 = vpop.f32.mrf.mxu3 }
 0x6b8   :  { %v1548_v5 = vpop.eup %1547  ;;  %v845_v6 = vadd.f32 %v1924_v54, %v844_v4 }
 0x6b9   :  { %1392 = vmatmul.msk.f32.gmra.mxu0 %vm67_vm0, %v1548_v5 }
 0x6ba   :  { %1549 = vtanh.f32 %v845_v6  ;;  %v1406_v6 = vld [vmem:[%s2078_s2 + $0x58] sm:$0xff] }
 0x6bb   :  { %1147 = vmatpush.msra.mxu1 %v1406_v6 }
 0x6bf   :  { %v847_v8 = vpop.f32.mrf.mxu3 }
 0x6c0   :  { %v1550_v9 = vpop.eup %1549  ;;  %v848_v10 = vadd.f32 %v1924_v54, %v847_v8 }
 0x6c1   :  { %1393 = vmatmul.msk.f32.gmra.mxu0 %vm67_vm0, %v1550_v9 }
 0x6c2   :  { %1551 = vtanh.f32 %v848_v10 }
 0x6c7   :  { %v849_v11 = vpop.f32.mrf.mxu3 }
 0x6c8   :  { %v1552_v12 = vpop.eup %1551  ;;  %v850_v13 = vadd.f32 %v1924_v54, %v849_v11 }
 0x6c9   :  { %1394 = vmatmul.msk.f32.gmra.mxu0 %vm67_vm0, %v1552_v12 }
 0x6ca   :  { %1553 = vtanh.f32 %v850_v13 }
 0x6cf   :  { %v852_v7 = vpop.f32.mrf.mxu3 }
 0x6d0   :  { %v1554_v14 = vpop.eup %1553  ;;  %v853_v15 = vadd.f32 %v1924_v54, %v852_v7 }
 0x6d1   :  { %1395 = vmatmul.msk.f32.gmra.mxu0 %vm67_vm0, %v1554_v14 }
 0x6d2   :  { %1555 = vtanh.f32 %v853_v15 }
 0x6d7   :  { %v854_v16 = vpop.f32.mrf.mxu3 }
 0x6d8   :  { %v1556_v17 = vpop.eup %1555  ;;  %v855_v18 = vadd.f32 %v1924_v54, %v854_v16 }
 0x6d9   :  { %1396 = vmatmul.msk.f32.gmra.mxu0 %vm67_vm0, %v1556_v17 }
 0x6da   :  { %1557 = vtanh.f32 %v855_v18 }
 0x6df   :  { %v857_v19 = vpop.f32.mrf.mxu3 }
 0x6e0   :  { %v1558_v20 = vpop.eup %1557  ;;  %v858_v21 = vadd.f32 %v1924_v54, %v857_v19 }
 0x6e1   :  { %1397 = vmatmul.msk.f32.gmra.mxu0 %vm67_vm0, %v1558_v20 }
 0x6e2   :  { %1559 = vtanh.f32 %v858_v21 }
 0x6e7   :  { %v859_v22 = vpop.f32.mrf.mxu3 }
 0x6e8   :  { %v1560_v23 = vpop.eup %1559  ;;  %v860_v24 = vadd.f32 %v1924_v54, %v859_v22 }
 0x6e9   :  { %1398 = vmatmul.msk.f32.gmra.mxu0 %vm67_vm0, %v1560_v23 }
 0x6ea   :  { %1561 = vtanh.f32 %v860_v24 }
 0x6ef   :  { %v862_v25 = vpop.f32.mrf.mxu3 }
 0x6f0   :  { %v1562_v27 = vpop.eup %1561  ;;  %v863_v28 = vadd.f32 %v1924_v54, %v862_v25 }
 0x6f1   :  { %1399 = vmatmul.msk.f32.gmra.mxu0 %vm67_vm0, %v1562_v27 }
 0x6f2   :  { %1563 = vtanh.f32 %v863_v28 }
 0x6f7   :  { %v864_v29 = vpop.f32.mrf.mxu3 }
 0x6f8   :  { %v1564_v30 = vpop.eup %1563  ;;  %v865_v31 = vadd.f32 %v1924_v54, %v864_v29 }
 0x6f9   :  { %1400 = vmatmul.msk.f32.gmra.mxu0 %vm67_vm0, %v1564_v30 }
 0x6fa   :  { %1565 = vtanh.f32 %v865_v31 }
 0x6ff   :  { %v867_v32 = vpop.f32.mrf.mxu3 }
 0x700   :  { %v1566_v26 = vpop.eup %1565  ;;  %v868_v33 = vadd.f32 %v1924_v54, %v867_v32 }
 0x701   :  { %1401 = vmatmul.msk.f32.gmra.mxu0 %vm67_vm0, %v1566_v26 }
 0x702   :  { %1567 = vtanh.f32 %v868_v33 }
 0x707   :  { %v869_v34 = vpop.f32.mrf.mxu3 }
 0x708   :  { %v1568_v35 = vpop.eup %1567  ;;  %v870_v36 = vadd.f32 %v1924_v54, %v869_v34 }
 0x709   :  { %1402 = vmatmul.msk.f32.gmra.mxu0 %vm67_vm0, %v1568_v35 }
 0x70a   :  { %1569 = vtanh.f32 %v870_v36 }
 0x710   :  { %v1570_v37 = vpop.eup %1569 }
 0x711   :  { %1403 = vmatmul.msk.f32.gmra.mxu0 %vm67_vm0, %v1570_v37 }
 0x716   :  { %v956_v38 = vpop.f32.mrf.mxu0 }
 0x71e   :  { %v959_v39 = vpop.f32.mrf.mxu0 }
 0x71f   :  { %v1004_v40 = vpack.c.bf16 %v959_v39, %v956_v38 }
 0x726   :  { %v962_v41 = vpop.f32.mrf.mxu0 }
 0x72e   :  { %v965_v49 = vpop.f32.mrf.mxu0 }
 0x72f   :  { %v1005_v50 = vpack.c.bf16 %v965_v49, %v962_v41 }
 0x736   :  { %v968_v53 = vpop.f32.mrf.mxu0 }
 0x73e   :  { %v971_v55 = vpop.f32.mrf.mxu0 }
 0x73f   :  { %v1006_v56 = vpack.c.bf16 %v971_v55, %v968_v53 }
 0x746   :  { %v974_v57 = vpop.f32.mrf.mxu0 }
 0x74e   :  { %v977_v58 = vpop.f32.mrf.mxu0 }
 0x74f   :  { %v1007_v52 = vpack.c.bf16 %v977_v58, %v974_v57 }
 0x756   :  { %v980_v59 = vpop.f32.mrf.mxu0 }
 0x75e   :  { %v983_v54 = vpop.f32.mrf.mxu0 }
 0x75f   :  { %v1008_v5 = vpack.c.bf16 %v983_v54, %v980_v59 }
 0x766   :  { %v986_v60 = vpop.f32.mrf.mxu0 }
 0x76e   :  { %v989_v61 = vpop.f32.mrf.mxu0 }
 0x76f   :  { %v1009_v4 = vpack.c.bf16 %v989_v61, %v986_v60 }
 0x776   :  { %v992_v62 = vpop.f32.mrf.mxu0 }
 0x77e   :  { %v995_v63 = vpop.f32.mrf.mxu0 }
 0x77f   :  { %v1010_v3 = vpack.c.bf16 %v995_v63, %v992_v62 }
 0x786   :  { %v998_v0 = vpop.f32.mrf.mxu0 }
 0x78e   :  { %v1001_v1 = vpop.f32.mrf.mxu0 }
 0x78f   :  { %v1011_v2 = vpack.c.bf16 %v1001_v1, %v998_v0 }
 0x791   :  { %1017 = vmatpush.bf16.msra.mxu2 %v1011_v2 }
 0x795   :  { %1018 = vmatpush.bf16.msra.mxu2 %v1010_v3 }
 0x799   :  { %1019 = vmatpush.bf16.msra.mxu2 %v1009_v4 }
 0x79d   :  { %1020 = vmatpush.bf16.msra.mxu2 %v1008_v5 }
 0x7a1   :  { %1021 = vmatpush.bf16.msra.mxu2 %v1007_v52 }
 0x7a5   :  { %1022 = vmatpush.bf16.msra.mxu2 %v1006_v56 }
 0x7a9   :  { %1023 = vmatpush.bf16.msra.mxu2 %v1005_v50 }
 0x7ad   :  { %1024 = vmatpush.bf16.msra.mxu2 %v1004_v40 }
 0x7b0   :  { %1025 = vmatmul.bf16.vlgmr.msra.gmra.mxu2 %v1738_v42  ;;  %v1405_v42 = vld [vmem:[%s2078_s2 + $0x50] sm:$0xff] }
 0x7b1   :  { %1148 = vmatpush.msra.mxu1 %v1405_v42 }
 0x7c0   :  { %1030 = vmatmul.bf16.gmra.mxu2 %v1741_v43  ;;  %v1975_v43 = vld [vmem:[%s2079_s3 + $0x4] ss:$0 sm:$0xff] }
 0x7d0   :  { %1035 = vmatmul.bf16.gmra.mxu2 %v1744_v44 }
 0x7e0   :  { %1040 = vmatmul.bf16.gmra.mxu2 %v1747_v45 }
 0x7f0   :  { %1045 = vmatmul.bf16.gmra.mxu2 %v1750_v46 }
 0x800   :  { %1050 = vmatmul.bf16.gmra.mxu2 %v1753_v47 }
 0x810   :  { %1055 = vmatmul.bf16.gmra.mxu2 %v1756_v48 }
 0x820   :  { %1060 = vmatmul.bf16.gmra.mxu2 %v1765_v51 }
 0x833   :  { %v1026_v44 = vpop.f32.mrf.mxu2 }
 0x834   :  { %v1027_v45 = vadd.f32 %v1975_v43, %v1026_v44 }
 0x836   :  { %1571 = vtanh.f32 %v1027_v45 }
 0x83b   :  { %v1028_v46 = vpop.f32.mrf.mxu2 }
 0x83c   :  { %v1572_v47 = vpop.eup %1571  ;;  %v1029_v48 = vadd.f32 %v1975_v43, %v1028_v46 }
 0x83d   :  { %1407 = vmatmul.msk.f32.vlgmr.msra.gmra.mxu1 %vm67_vm0, %v1572_v47 }
 0x83e   :  { %1573 = vtanh.f32 %v1029_v48 }
 0x843   :  { %v1031_v8 = vpop.f32.mrf.mxu2 }
 0x844   :  { %v1574_v9 = vpop.eup %1573  ;;  %v1032_v51 = vadd.f32 %v1975_v43, %v1031_v8 }
 0x845   :  { %1408 = vmatmul.msk.f32.gmra.mxu1 %vm67_vm0, %v1574_v9 }
 0x846   :  { %1575 = vtanh.f32 %v1032_v51 }
 0x84b   :  { %v1033_v10 = vpop.f32.mrf.mxu2 }
 0x84c   :  { %v1576_v11 = vpop.eup %1575  ;;  %v1034_v12 = vadd.f32 %v1975_v43, %v1033_v10  ;;  %v1603_v10 = vld [vmem:[#allocation2] sm:$0xff] }
 0x84d   :  { %1409 = vmatmul.msk.f32.gmra.mxu1 %vm67_vm0, %v1576_v11  ;;  %v1604_v11 = vld [vmem:[#allocation2 + $0x8] sm:$0xff] }
 0x84e   :  { %1577 = vtanh.f32 %v1034_v12  ;;  %v1605_v12 = vld [vmem:[#allocation2 + $0x10] sm:$0xff] }
 0x853   :  { %v1036_v13 = vpop.f32.mrf.mxu2 }
 0x854   :  { %v1578_v7 = vpop.eup %1577  ;;  %v1037_v14 = vadd.f32 %v1975_v43, %v1036_v13  ;;  %v1606_v13 = vld [vmem:[#allocation2 + $0x18] sm:$0xff] }
 0x855   :  { %1410 = vmatmul.msk.f32.gmra.mxu1 %vm67_vm0, %v1578_v7  ;;  %v1607_v7 = vld [vmem:[#allocation2 + $0x20] sm:$0xff] }
 0x856   :  { %1579 = vtanh.f32 %v1037_v14  ;;  %v1608_v14 = vld [vmem:[#allocation2 + $0x28] sm:$0xff] }
 0x85b   :  { %v1038_v15 = vpop.f32.mrf.mxu2 }
 0x85c   :  { %v1580_v16 = vpop.eup %1579  ;;  %v1039_v17 = vadd.f32 %v1975_v43, %v1038_v15  ;;  %v1609_v15 = vld [vmem:[#allocation2 + $0x30] sm:$0xff] }
 0x85d   :  { %1411 = vmatmul.msk.f32.gmra.mxu1 %vm67_vm0, %v1580_v16  ;;  %v1610_v16 = vld [vmem:[#allocation2 + $0x38] sm:$0xff] }
 0x85e   :  { %1581 = vtanh.f32 %v1039_v17  ;;  %v1442_v17 = vld [vmem:[%s2079_s3 + $0x5] ss:$0 sm:$0xff] }
 0x863   :  { %v1041_v18 = vpop.f32.mrf.mxu2 }
 0x864   :  { %v1582_v19 = vpop.eup %1581  ;;  %v1042_v20 = vadd.f32 %v1975_v43, %v1041_v18 }
 0x865   :  { %1412 = vmatmul.msk.f32.gmra.mxu1 %vm67_vm0, %v1582_v19 }
 0x866   :  { %1583 = vtanh.f32 %v1042_v20 }
 0x86b   :  { %v1043_v21 = vpop.f32.mrf.mxu2 }
 0x86c   :  { %v1584_v22 = vpop.eup %1583  ;;  %v1044_v23 = vadd.f32 %v1975_v43, %v1043_v21 }
 0x86d   :  { %1413 = vmatmul.msk.f32.gmra.mxu1 %vm67_vm0, %v1584_v22 }
 0x86e   :  { %1585 = vtanh.f32 %v1044_v23 }
 0x873   :  { %v1046_v24 = vpop.f32.mrf.mxu2 }
 0x874   :  { %v1586_v25 = vpop.eup %1585  ;;  %v1047_v27 = vadd.f32 %v1975_v43, %v1046_v24 }
 0x875   :  { %1414 = vmatmul.msk.f32.gmra.mxu1 %vm67_vm0, %v1586_v25 }
 0x876   :  { %1587 = vtanh.f32 %v1047_v27 }
 0x87b   :  { %v1048_v28 = vpop.f32.mrf.mxu2 }
 0x87c   :  { %v1588_v29 = vpop.eup %1587  ;;  %v1049_v30 = vadd.f32 %v1975_v43, %v1048_v28 }
 0x87d   :  { %1415 = vmatmul.msk.f32.gmra.mxu1 %vm67_vm0, %v1588_v29 }
 0x87e   :  { %1589 = vtanh.f32 %v1049_v30 }
 0x883   :  { %v1051_v31 = vpop.f32.mrf.mxu2 }
 0x884   :  { %v1590_v32 = vpop.eup %1589  ;;  %v1052_v26 = vadd.f32 %v1975_v43, %v1051_v31 }
 0x885   :  { %1416 = vmatmul.msk.f32.gmra.mxu1 %vm67_vm0, %v1590_v32 }
 0x886   :  { %1591 = vtanh.f32 %v1052_v26 }
 0x88b   :  { %v1053_v33 = vpop.f32.mrf.mxu2 }
 0x88c   :  { %v1592_v34 = vpop.eup %1591  ;;  %v1054_v35 = vadd.f32 %v1975_v43, %v1053_v33 }
 0x88d   :  { %1417 = vmatmul.msk.f32.gmra.mxu1 %vm67_vm0, %v1592_v34 }
 0x88e   :  { %1593 = vtanh.f32 %v1054_v35 }
 0x893   :  { %v1056_v36 = vpop.f32.mrf.mxu2 }
 0x894   :  { %v1594_v37 = vpop.eup %1593  ;;  %v1057_v38 = vadd.f32 %v1975_v43, %v1056_v36 }
 0x895   :  { %1418 = vmatmul.msk.f32.gmra.mxu1 %vm67_vm0, %v1594_v37 }
 0x896   :  { %1595 = vtanh.f32 %v1057_v38 }
 0x89b   :  { %v1058_v39 = vpop.f32.mrf.mxu2 }
 0x89c   :  { %v1596_v40 = vpop.eup %1595  ;;  %v1059_v41 = vadd.f32 %v1975_v43, %v1058_v39 }
 0x89d   :  { %1419 = vmatmul.msk.f32.gmra.mxu1 %vm67_vm0, %v1596_v40 }
 0x89e   :  { %1597 = vtanh.f32 %v1059_v41 }
 0x8a3   :  { %v1061_v49 = vpop.f32.mrf.mxu2 }
 0x8a4   :  { %v1598_v50 = vpop.eup %1597  ;;  %v1062_v53 = vadd.f32 %v1975_v43, %v1061_v49 }
 0x8a5   :  { %1420 = vmatmul.msk.f32.gmra.mxu1 %vm67_vm0, %v1598_v50 }
 0x8a6   :  { %1599 = vtanh.f32 %v1062_v53 }
 0x8ab   :  { %v1063_v55 = vpop.f32.mrf.mxu2 }
 0x8ac   :  { %v1600_v56 = vpop.eup %1599  ;;  %v1064_v57 = vadd.f32 %v1975_v43, %v1063_v55 }
 0x8ad   :  { %1421 = vmatmul.msk.f32.gmra.mxu1 %vm67_vm0, %v1600_v56 }
 0x8ae   :  { %1601 = vtanh.f32 %v1064_v57 }
 0x8b4   :  { %v1602_v58 = vpop.eup %1601 }
 0x8b5   :  { %1422 = vmatmul.msk.f32.gmra.mxu1 %vm67_vm0, %v1602_v58 }
 0x8ba   :  { %v1150_v52 = vpop.f32.mrf.mxu1 }
 0x8c2   :  { %v1153_v59 = vpop.f32.mrf.mxu1 }
 0x8c3   :  { %v1198_v54 = vpack.c.bf16 %v1153_v59, %v1150_v52 }
 0x8ca   :  { %v1156_v60 = vpop.f32.mrf.mxu1 }
 0x8d2   :  { %v1159_v61 = vpop.f32.mrf.mxu1 }
 0x8d3   :  { %v1199_v62 = vpack.c.bf16 %v1159_v61, %v1156_v60 }
 0x8da   :  { %v1162_v63 = vpop.f32.mrf.mxu1 }
 0x8e2   :  { %v1165_v0 = vpop.f32.mrf.mxu1 }
 0x8e3   :  { %v1200_v1 = vpack.c.bf16 %v1165_v0, %v1162_v63 }
 0x8ea   :  { %v1168_v2 = vpop.f32.mrf.mxu1 }
 0x8f2   :  { %v1171_v3 = vpop.f32.mrf.mxu1 }
 0x8f3   :  { %v1201_v4 = vpack.c.bf16 %v1171_v3, %v1168_v2 }
 0x8fa   :  { %v1174_v5 = vpop.f32.mrf.mxu1 }
 0x902   :  { %v1177_v6 = vpop.f32.mrf.mxu1 }
 0x903   :  { %v1202_v51 = vpack.c.bf16 %v1177_v6, %v1174_v5 }
 0x90a   :  { %v1180_v42 = vpop.f32.mrf.mxu1 }
 0x912   :  { %v1183_v43 = vpop.f32.mrf.mxu1 }
 0x913   :  { %v1203_v9 = vpack.c.bf16 %v1183_v43, %v1180_v42 }
 0x91a   :  { %v1186_v44 = vpop.f32.mrf.mxu1 }
 0x922   :  { %v1189_v45 = vpop.f32.mrf.mxu1 }
 0x923   :  { %v1204_v8 = vpack.c.bf16 %v1189_v45, %v1186_v44 }
 0x92a   :  { %v1192_v46 = vpop.f32.mrf.mxu1 }
 0x932   :  { %v1195_v47 = vpop.f32.mrf.mxu1 }
 0x933   :  { %v1205_v48 = vpack.c.bf16 %v1195_v47, %v1192_v46 }
 0x935   :  { %1211 = vmatpush.bf16.msra.mxu3 %v1205_v48 }
 0x939   :  { %1212 = vmatpush.bf16.msra.mxu3 %v1204_v8 }
 0x93d   :  { %1213 = vmatpush.bf16.msra.mxu3 %v1203_v9 }
 0x941   :  { %1214 = vmatpush.bf16.msra.mxu3 %v1202_v51 }
 0x945   :  { %1215 = vmatpush.bf16.msra.mxu3 %v1201_v4 }
 0x949   :  { %1216 = vmatpush.bf16.msra.mxu3 %v1200_v1 }
 0x94d   :  { %1217 = vmatpush.bf16.msra.mxu3 %v1199_v62 }
 0x951   :  { %1218 = vmatpush.bf16.msra.mxu3 %v1198_v54 }
 0x954   :  { %1219 = vmatmul.bf16.vlgmr.msra.gmra.mxu3 %v1603_v10 }
 0x964   :  { %1224 = vmatmul.bf16.gmra.mxu3 %v1604_v11 }
 0x974   :  { %1229 = vmatmul.bf16.gmra.mxu3 %v1605_v12 }
 0x984   :  { %1234 = vmatmul.bf16.gmra.mxu3 %v1606_v13 }
 0x994   :  { %1239 = vmatmul.bf16.gmra.mxu3 %v1607_v7 }
 0x9a4   :  { %1244 = vmatmul.bf16.gmra.mxu3 %v1608_v14 }
 0x9b4   :  { %1249 = vmatmul.bf16.gmra.mxu3 %v1609_v15 }
 0x9c4   :  { %1254 = vmatmul.bf16.gmra.mxu3 %v1610_v16 }
 0x9d7   :  { %v1220_v18 = vpop.f32.mrf.mxu3 }
 0x9d8   :  { %v1221_v19 = vadd.f32 %v1442_v17, %v1220_v18 }
 0x9da   :  { %1260 = vst.msk [vmem:[%s2080_s4] sm:$0xff] %vm67_vm0, %v1221_v19 }
 0x9df   :  { %v1222_v20 = vpop.f32.mrf.mxu3 }
 0x9e0   :  { %v1223_v21 = vadd.f32 %v1442_v17, %v1222_v20 }
 0x9e2   :  { %1261 = vst.msk [vmem:[%s2080_s4 + $0x8] sm:$0xff] %vm67_vm0, %v1223_v21 }
 0x9e7   :  { %v1225_v22 = vpop.f32.mrf.mxu3 }
 0x9e8   :  { %v1226_v23 = vadd.f32 %v1442_v17, %v1225_v22 }
 0x9ea   :  { %1262 = vst.msk [vmem:[%s2080_s4 + $0x10] sm:$0xff] %vm67_vm0, %v1226_v23 }
 0x9ef   :  { %v1227_v24 = vpop.f32.mrf.mxu3 }
 0x9f0   :  { %v1228_v25 = vadd.f32 %v1442_v17, %v1227_v24 }
 0x9f2   :  { %1263 = vst.msk [vmem:[%s2080_s4 + $0x18] sm:$0xff] %vm67_vm0, %v1228_v25 }
 0x9f7   :  { %v1230_v27 = vpop.f32.mrf.mxu3 }
 0x9f8   :  { %v1231_v28 = vadd.f32 %v1442_v17, %v1230_v27 }
 0x9fa   :  { %1264 = vst.msk [vmem:[%s2080_s4 + $0x20] sm:$0xff] %vm67_vm0, %v1231_v28 }
 0x9ff   :  { %v1232_v29 = vpop.f32.mrf.mxu3 }
 0xa00   :  { %v1233_v30 = vadd.f32 %v1442_v17, %v1232_v29 }
 0xa02   :  { %1265 = vst.msk [vmem:[%s2080_s4 + $0x28] sm:$0xff] %vm67_vm0, %v1233_v30 }
 0xa07   :  { %v1235_v31 = vpop.f32.mrf.mxu3 }
 0xa08   :  { %v1236_v32 = vadd.f32 %v1442_v17, %v1235_v31 }
 0xa0a   :  { %1266 = vst.msk [vmem:[%s2080_s4 + $0x30] sm:$0xff] %vm67_vm0, %v1236_v32 }
 0xa0f   :  { %v1237_v26 = vpop.f32.mrf.mxu3 }
 0xa10   :  { %v1238_v33 = vadd.f32 %v1442_v17, %v1237_v26 }
 0xa12   :  { %1267 = vst.msk [vmem:[%s2080_s4 + $0x38] sm:$0xff] %vm67_vm0, %v1238_v33 }
 0xa17   :  { %v1240_v34 = vpop.f32.mrf.mxu3 }
 0xa18   :  { %v1241_v35 = vadd.f32 %v1442_v17, %v1240_v34 }
 0xa1a   :  { %1268 = vst.msk [vmem:[%s2080_s4 + $0x40] sm:$0xff] %vm67_vm0, %v1241_v35 }
 0xa1f   :  { %v1242_v36 = vpop.f32.mrf.mxu3 }
 0xa20   :  { %v1243_v37 = vadd.f32 %v1442_v17, %v1242_v36 }
 0xa22   :  { %1269 = vst.msk [vmem:[%s2080_s4 + $0x48] sm:$0xff] %vm67_vm0, %v1243_v37 }
 0xa27   :  { %v1245_v38 = vpop.f32.mrf.mxu3 }
 0xa28   :  { %v1246_v39 = vadd.f32 %v1442_v17, %v1245_v38 }
 0xa2a   :  { %1270 = vst.msk [vmem:[%s2080_s4 + $0x50] sm:$0xff] %vm67_vm0, %v1246_v39 }
 0xa2f   :  { %v1247_v40 = vpop.f32.mrf.mxu3 }
 0xa30   :  { %v1248_v41 = vadd.f32 %v1442_v17, %v1247_v40 }
 0xa32   :  { %1271 = vst.msk [vmem:[%s2080_s4 + $0x58] sm:$0xff] %vm67_vm0, %v1248_v41 }
 0xa37   :  { %v1250_v49 = vpop.f32.mrf.mxu3 }
 0xa38   :  { %v1251_v50 = vadd.f32 %v1442_v17, %v1250_v49 }
 0xa3a   :  { %1272 = vst.msk [vmem:[%s2080_s4 + $0x60] sm:$0xff] %vm67_vm0, %v1251_v50 }
 0xa3f   :  { %v1252_v53 = vpop.f32.mrf.mxu3 }
 0xa40   :  { %v1253_v55 = vadd.f32 %v1442_v17, %v1252_v53 }
 0xa42   :  { %1273 = vst.msk [vmem:[%s2080_s4 + $0x68] sm:$0xff] %vm67_vm0, %v1253_v55 }
 0xa47   :  { %v1255_v56 = vpop.f32.mrf.mxu3 }
 0xa48   :  { %v1256_v57 = vadd.f32 %v1442_v17, %v1255_v56 }
 0xa4a   :  { %1274 = vst.msk [vmem:[%s2080_s4 + $0x70] sm:$0xff] %vm67_vm0, %v1256_v57 }
 0xa4f   :  { %v1257_v58 = vpop.f32.mrf.mxu3 }
 0xa50   :  { %v1258_v52 = vadd.f32 %v1442_v17, %v1257_v58 }
 0xa52   :  { %1275 = vst.msk [vmem:[%s2080_s4 + $0x78] sm:$0xff] %vm67_vm0, %v1258_v52 }
 0xa53   :  { %1280 = vsyncpa [#allocation3], 1 }

</bundles_post_ra>
